<compile_context>
chip_gen: v7x
topology: tpu7x:2x2x1
jax: 0.10.0
libtpu: 0.0.40
codegen_flags: <defaults>
</compile_context>

<pallas_src>
import jax
import jax.numpy as jnp
from jax.experimental import pallas as pl
from jax.experimental.pallas import tpu as pltpu


_VMEM = pl.BlockSpec(memory_space=pltpu.MemorySpace.VMEM)


# ----------------------------------------------------------------------------
# Fused kernel: 2 x bidirectional LSTM layers + fc + sigmoid
# ----------------------------------------------------------------------------
def fused_bilstm_fc_kernel(proj1_ref, tfrom_ref, tto_ref,
                           wh1_ref, wx2_ref, b2_ref, wh2_ref,
                           fcw_ref, fcb_ref,
                           out_ref):
    """All shapes static.

    proj1_ref: [T*BD, 4H] f32  layer-1 gate projections (embedding pre-fused
                               with Wx1 + bias), direction-blocked per step:
                               rows 0:NB = fwd @ time s, rows NB:BD = bwd @
                               time T-1-s.
    tfrom/tto: [BD, 1]    i32  row updates iff tfrom <= step < tto.
    wh1_ref:   [2H, 4H]  bf16  block-stacked [[Wh1_f]; [Wh1_b]] (gates i,f,g,o).
    wx2_ref:   [2H, 8H]  bf16  lane-concat [Wx2_f | Wx2_b] (gate-stacked).
    b2_ref:    [1, 8H]    f32  [b2_f | b2_b].
    wh2_ref:   [2H, 4H]  bf16  block-stacked [[Wh2_f]; [Wh2_b]].
    fcw_ref:   [4H, O], fcb_ref: [1, O]  f32.
    out_ref:   [B, O]     f32  sigmoid(fc(hidden)).
    """
    TBD, G = proj1_ref.shape       # G = 4H
    H = G // 4
    BD = tfrom_ref.shape[0]        # 4*B rows: (left|right) x (fwd|bwd)
    T = TBD // BD
    NB = BD // 2                   # sequence rows = 2*B
    B = out_ref.shape[0]

    tf = tfrom_ref[...]            # [BD, 1] i32
    tt = tto_ref[...]

    # Direction block mask [BD, 2H]: fwd rows own lanes [0:H], bwd rows [H:2H].
    rows = jax.lax.broadcasted_iota(jnp.int32, (BD, 2 * H), 0)
    lanes = jax.lax.broadcasted_iota(jnp.int32, (BD, 2 * H), 1)
    dmask = ((rows < NB) == (lanes < H)).astype(jnp.float32)

    def sigmoid1(x):
        # Single-EUP sigmoid (tanh form) -- avoids an exp + divide lowering.
        return 0.5 * jnp.tanh(0.5 * x) + 0.5

    def lstm_scan(p_steps, wh, collect_y):
        """p_steps: list of T per-step gate projections [BD, 4H] (values)."""
        wh_mx = wh.astype(jnp.bfloat16)                  # MXU operand only
        h_blk = jnp.zeros((BD, 2 * H), jnp.float32)      # block-diag state
        c = jnp.zeros((BD, H), jnp.float32)
        ys = []
        for s in range(T):                               # static unroll
            rec = jnp.dot(h_blk.astype(jnp.bfloat16), wh_mx,
                          preferred_element_type=jnp.float32)     # [BD, 4H]
            gates = p_steps[s] + rec
            sig = sigmoid1(gates)                        # full-vreg EUP ops
            th = jnp.tanh(gates)
            i_g = sig[:, 0 * H:1 * H]
            f_g = sig[:, 1 * H:2 * H]
            g_g = th[:, 2 * H:3 * H]
            o_g = sig[:, 3 * H:4 * H]
            c_new = f_g * c + i_g * g_g
            h_new = o_g * jnp.tanh(c_new)                # [BD, H]
            valid = (tf <= s) & (tt > s)                 # [BD, 1] bool
            c = jnp.where(valid, c_new, c)
            h_blk_new = jnp.concatenate([h_new, h_new], axis=1) * dmask
            h_blk = jnp.where(valid, h_blk_new, h_blk)
            if collect_y:
                ys.append(jnp.where(valid, h_new, 0.0))  # zero at padded steps
        return h_blk, ys

    # ---- layer 1 (input projection fully precomputed wrapper-side) ----------
    proj1 = proj1_ref[...]                                          # [T*BD, 4H]
    p1_steps = [proj1[s * BD:(s + 1) * BD, :] for s in range(T)]
    _, ys = lstm_scan(p1_steps, wh1_ref[...], collect_y=True)

    # ---- layer-2 input projection: register-resident, one matmul ------------
    # ys[s]: rows 0:NB = fwd output @ time s, rows NB:BD = bwd output @ T-1-s.
    # y_time[t] = [y_fwd(t) | y_bwd(t)]  (padded times already zero).
    y_time = [jnp.concatenate([ys[t][0:NB, :], ys[T - 1 - t][NB:BD, :]], axis=1)
              for t in range(T)]
    y_all = jnp.concatenate(y_time, axis=0)                         # [T*NB, 2H]
    p2 = jnp.dot(y_all.astype(jnp.bfloat16), wx2_ref[...],
                 preferred_element_type=jnp.float32) + b2_ref[...]  # [T*NB, 8H]
    pf = p2[:, :G]                                                  # fwd, by time
    pb = p2[:, G:]                                                  # bwd, by time
    p2_steps = [jnp.concatenate([pf[NB * s:NB * (s + 1), :],
                                 pb[NB * (T - 1 - s):NB * (T - s), :]], axis=0)
                for s in range(T)]

    # ---- layer 2 -------------------------------------------------------------
    h2_blk, _ = lstm_scan(p2_steps, wh2_ref[...], collect_y=False)
    h2 = h2_blk[:, 0:H] + h2_blk[:, H:2 * H]            # un-block (other half 0)

    # ---- hidden = cat(l_fwd, l_bwd, r_fwd, r_bwd) + fc + sigmoid ------------
    hidden = jnp.concatenate([h2[0:B, :], h2[2 * B:3 * B, :],
                              h2[B:2 * B, :], h2[3 * B:4 * B, :]], axis=1)  # [B,4H]
    logits = jnp.dot(hidden, fcw_ref[...],
                     preferred_element_type=jnp.float32) + fcb_ref[...]
    out_ref[...] = sigmoid1(logits).astype(out_ref.dtype)


# ----------------------------------------------------------------------------
# Parameter init (PyTorch-like raw shapes; fused once by prepare_params)
# ----------------------------------------------------------------------------
def init_params(key, vocab_size, embedding_dim, hidden_dim, output_dim, n_layers):
    scale = 0.1
    keys = jax.random.split(key, 3 + 2 * n_layers)
    params = {
        "embedding": scale * jax.random.normal(
            keys[0], (vocab_size, embedding_dim), jnp.float32),
        "fc_w": scale * jax.random.normal(
            keys[1], (2 * 2 * hidden_dim, output_dim), jnp.float32),
        "fc_b": scale * jax.random.normal(keys[2], (1, output_dim), jnp.float32),
        "lstm": [],
    }
    for layer in range(n_layers):
        in_dim = embedding_dim if layer == 0 else 2 * hidden_dim
        layer_params = {}
        for d, name in enumerate(("fwd", "bwd")):
            dk = jax.random.split(keys[3 + 2 * layer + d], 3)
            wx = scale * jax.random.normal(dk[0], (4, in_dim, hidden_dim), jnp.float32)
            wh = scale * jax.random.normal(dk[1], (4, hidden_dim, hidden_dim), jnp.float32)
            b = scale * jax.random.normal(dk[2], (4, 1, hidden_dim), jnp.float32)
            layer_params[name] = (wx, wh, b)   # gate order (i, f, g, o)
        params["lstm"].append(layer_params)
    return params


def _stack_gates(w):       # [4, Din, H] -> [Din, 4H]   lanes: [i | f | g | o]
    return jnp.transpose(w, (1, 0, 2)).reshape(w.shape[1], 4 * w.shape[2])


def _stack_bias(b):        # [4, 1, H]   -> [1, 4H]
    return jnp.transpose(b, (1, 0, 2)).reshape(1, 4 * b.shape[2])


def prepare_params(params):
    """One-time weight fusion (hoisted out of the per-call forward)."""
    assert len(params["lstm"]) == 2, "fused kernel is specialized for n_layers=2"
    emb = params["embedding"]                                   # [V, E]
    (wx1f, wh1f, b1f) = params["lstm"][0]["fwd"]
    (wx1b, wh1b, b1b) = params["lstm"][0]["bwd"]
    (wx2f, wh2f, b2f) = params["lstm"][1]["fwd"]
    (wx2b, wh2b, b2b) = params["lstm"][1]["bwd"]

    # Pre-fuse embedding with layer-1 input weights + bias: [2V, 4H] table
    # (row v = fwd projection of token v; row V+v = bwd projection).
    pf_tab = emb @ _stack_gates(wx1f) + _stack_bias(b1f)
    pb_tab = emb @ _stack_gates(wx1b) + _stack_bias(b1b)
    proj1_table = jnp.concatenate([pf_tab, pb_tab], axis=0).astype(jnp.float32)

    return {
        "proj1_table": proj1_table,                                            # [2V, 4H]
        "wh1": jnp.concatenate([_stack_gates(wh1f), _stack_gates(wh1b)],
                               axis=0).astype(jnp.bfloat16),                   # [2H, 4H]
        "wx2": jnp.concatenate([_stack_gates(wx2f), _stack_gates(wx2b)],
                               axis=1).astype(jnp.bfloat16),                   # [2H, 8H]
        "b2": jnp.concatenate([_stack_bias(b2f), _stack_bias(b2b)], axis=1),   # [1, 8H]
        "wh2": jnp.concatenate([_stack_gates(wh2f), _stack_gates(wh2b)],
                               axis=0).astype(jnp.bfloat16),                   # [2H, 4H]
        "fc_w": params["fc_w"],
        "fc_b": params["fc_b"],
    }


# ----------------------------------------------------------------------------
# Forward pass (single pallas_call)
# ----------------------------------------------------------------------------
def supply_classifier_forward(prepared, left_text, right_text,
                              left_text_lengths, right_text_lengths):
    B, T = left_text.shape
    NB = 2 * B                     # sequence rows: left batch ++ right batch
    BD = 2 * NB                    # lstm rows: fwd rows ++ bwd rows
    V = prepared["proj1_table"].shape[0] // 2
    O = prepared["fc_w"].shape[1]

    # --- layer-1 gate projections via one row gather over the fused table ----
    tok = jnp.concatenate([left_text, right_text], axis=0).astype(jnp.int32)  # [NB, T]
    tok_t = jnp.transpose(tok)                                                # [T, NB]
    idx = jnp.concatenate([tok_t, tok_t[::-1] + V], axis=1)                   # [T, BD]
    proj1 = prepared["proj1_table"][idx.reshape(-1)]                          # [T*BD, 4H]

    # --- per-row valid step range [t_from, t_to) ------------------------------
    lens = jnp.concatenate([left_text_lengths, right_text_lengths]).astype(jnp.int32)
    t_from = jnp.concatenate([jnp.zeros_like(lens), T - lens]).reshape(BD, 1)
    t_to = jnp.concatenate([lens, jnp.full_like(lens, T)]).reshape(BD, 1)

    return pl.pallas_call(
        fused_bilstm_fc_kernel,
        out_shape=jax.ShapeDtypeStruct((B, O), jnp.float32),
        in_specs=[_VMEM] * 9,
        out_specs=_VMEM,
    )(proj1, t_from, t_to,
      prepared["wh1"], prepared["wx2"], prepared["b2"], prepared["wh2"],
      prepared["fc_w"], prepared["fc_b"])


# ----------------------------------------------------------------------------
if __name__ == "__main__":
    vocab_size, embedding_dim, hidden_dim, output_dim = 50, 32, 32, 1
    n_layers, bidirectional, dropout = 2, True, 0.5   # dropout inactive (eval)

    B, T = 2, 8
    key = jax.random.PRNGKey(0)
    k_param, k_left, k_right = jax.random.split(key, 3)

    params = init_params(k_param, vocab_size, embedding_dim, hidden_dim,
                         output_dim, n_layers)
    prepared = jax.block_until_ready(prepare_params(params))   # one-time fusion

    left_text = jax.random.randint(k_left, (B, T), 0, vocab_size, dtype=jnp.int32)
    right_text = jax.random.randint(k_right, (B, T), 0, vocab_size, dtype=jnp.int32)
    left_text_lengths = jnp.array([8, 5], dtype=jnp.int32)
    right_text_lengths = jnp.array([6, 8], dtype=jnp.int32)

    fwd = jax.jit(supply_classifier_forward)
    out = fwd(prepared, left_text, right_text, left_text_lengths, right_text_lengths)
    out = jax.block_until_ready(out)

    assert out.shape == (B, output_dim), out.shape
    assert bool(jnp.all(jnp.isfinite(out)))
    assert bool(jnp.all((out > 0.0) & (out < 1.0)))
    print("KERNEL_OK")
</pallas_src>

<mosaic_0001>
module attributes {stable_mosaic.version = 11 : i64} {
  func.func @fused_bilstm_fc_kernel(%arg0: memref<64x128xf32, #tpu.memory_space<vmem>>, %arg1: memref<8x1xi32, #tpu.memory_space<vmem>>, %arg2: memref<8x1xi32, #tpu.memory_space<vmem>>, %arg3: memref<64x128xbf16, #tpu.memory_space<vmem>>, %arg4: memref<64x256xbf16, #tpu.memory_space<vmem>>, %arg5: memref<1x256xf32, #tpu.memory_space<vmem>>, %arg6: memref<64x128xbf16, #tpu.memory_space<vmem>>, %arg7: memref<128x1xf32, #tpu.memory_space<vmem>>, %arg8: memref<1x1xf32, #tpu.memory_space<vmem>>, %arg9: memref<2x1xf32, #tpu.memory_space<vmem>>) attributes {dimension_semantics = [], scalar_prefetch = 0 : i64, scratch_operands = 0 : i64, tpu.core_type = #tpu.core_type<tc>} {
    %c0 = arith.constant 0 : index
    %c0_0 = arith.constant 0 : index
    %0 = vector.load %arg1[%c0, %c0_0] : memref<8x1xi32, #tpu.memory_space<vmem>>, vector<8x1xi32>
    %c0_1 = arith.constant 0 : index
    %c0_2 = arith.constant 0 : index
    %1 = vector.load %arg2[%c0_1, %c0_2] : memref<8x1xi32, #tpu.memory_space<vmem>>, vector<8x1xi32>
    %2 = tpu.iota {dimensions = array<i32: 0>} : vector<8x64xi32>
    %3 = tpu.iota {dimensions = array<i32: 1>} : vector<8x64xi32>
    %c4_i32 = arith.constant 4 : i32
    %4 = vector.broadcast %c4_i32 : i32 to vector<8x64xi32>
    %5 = arith.cmpi slt, %2, %4 : vector<8x64xi32>
    %c32_i32 = arith.constant 32 : i32
    %6 = vector.broadcast %c32_i32 : i32 to vector<8x64xi32>
    %7 = arith.cmpi slt, %3, %6 : vector<8x64xi32>
    %8 = arith.xori %5, %7 : vector<8x64xi1>
    %cst = arith.constant dense<true> : vector<8x64xi1>
    %9 = arith.xori %8, %cst : vector<8x64xi1>
    %10 = arith.extui %9 : vector<8x64xi1> to vector<8x64xi32>
    %11 = arith.sitofp %10 : vector<8x64xi32> to vector<8x64xf32>
    %c0_3 = arith.constant 0 : index
    %c0_4 = arith.constant 0 : index
    %12 = vector.load %arg0[%c0_3, %c0_4] : memref<64x128xf32, #tpu.memory_space<vmem>>, vector<64x128xf32>
    %13 = vector.extract_strided_slice %12 {offsets = [0, 0], sizes = [8, 128], strides = [1, 1]} : vector<64x128xf32> to vector<8x128xf32>
    %14 = vector.extract_strided_slice %12 {offsets = [8, 0], sizes = [8, 128], strides = [1, 1]} : vector<64x128xf32> to vector<8x128xf32>
    %15 = vector.extract_strided_slice %12 {offsets = [16, 0], sizes = [8, 128], strides = [1, 1]} : vector<64x128xf32> to vector<8x128xf32>
    %16 = vector.extract_strided_slice %12 {offsets = [24, 0], sizes = [8, 128], strides = [1, 1]} : vector<64x128xf32> to vector<8x128xf32>
    %17 = vector.extract_strided_slice %12 {offsets = [32, 0], sizes = [8, 128], strides = [1, 1]} : vector<64x128xf32> to vector<8x128xf32>
    %18 = vector.extract_strided_slice %12 {offsets = [40, 0], sizes = [8, 128], strides = [1, 1]} : vector<64x128xf32> to vector<8x128xf32>
    %19 = vector.extract_strided_slice %12 {offsets = [48, 0], sizes = [8, 128], strides = [1, 1]} : vector<64x128xf32> to vector<8x128xf32>
    %20 = vector.extract_strided_slice %12 {offsets = [56, 0], sizes = [8, 128], strides = [1, 1]} : vector<64x128xf32> to vector<8x128xf32>
    %c0_5 = arith.constant 0 : index
    %c0_6 = arith.constant 0 : index
    %21 = vector.load %arg3[%c0_5, %c0_6] : memref<64x128xbf16, #tpu.memory_space<vmem>>, vector<64x128xbf16>
    %cst_7 = arith.constant 0.000000e+00 : f32
    %22 = vector.broadcast %cst_7 : f32 to vector<8x64xf32>
    %cst_8 = arith.constant 0.000000e+00 : f32
    %23 = vector.broadcast %cst_8 : f32 to vector<8x32xf32>
    %24 = arith.truncf %22 : vector<8x64xf32> to vector<8x64xbf16>
    %cst_9 = arith.constant dense<0.000000e+00> : vector<8x128xf32>
    %25 = tpu.matmul %24, %21, %cst_9 {dimension_numbers = #tpu.dot_dimension_numbers<[1], [0], [0], [1], [0, 0, 1, 1], [], []>} : vector<8x64xbf16>, vector<64x128xbf16>, vector<8x128xf32> -> vector<8x128xf32>
    %26 = arith.addf %13, %25 : vector<8x128xf32>
    %cst_10 = arith.constant 5.000000e-01 : f32
    %27 = vector.broadcast %cst_10 : f32 to vector<8x128xf32>
    %28 = arith.mulf %27, %26 : vector<8x128xf32>
    %29 = math.tanh %28 : vector<8x128xf32>
    %cst_11 = arith.constant 5.000000e-01 : f32
    %30 = vector.broadcast %cst_11 : f32 to vector<8x128xf32>
    %31 = arith.mulf %30, %29 : vector<8x128xf32>
    %cst_12 = arith.constant 5.000000e-01 : f32
    %32 = vector.broadcast %cst_12 : f32 to vector<8x128xf32>
    %33 = arith.addf %31, %32 : vector<8x128xf32>
    %34 = math.tanh %26 : vector<8x128xf32>
    %35 = vector.extract_strided_slice %33 {offsets = [0, 0], sizes = [8, 32], strides = [1, 1]} : vector<8x128xf32> to vector<8x32xf32>
    %36 = vector.extract_strided_slice %33 {offsets = [0, 32], sizes = [8, 32], strides = [1, 1]} : vector<8x128xf32> to vector<8x32xf32>
    %37 = vector.extract_strided_slice %34 {offsets = [0, 64], sizes = [8, 32], strides = [1, 1]} : vector<8x128xf32> to vector<8x32xf32>
    %38 = vector.extract_strided_slice %33 {offsets = [0, 96], sizes = [8, 32], strides = [1, 1]} : vector<8x128xf32> to vector<8x32xf32>
    %39 = arith.mulf %36, %23 : vector<8x32xf32>
    %40 = arith.mulf %35, %37 : vector<8x32xf32>
    %41 = arith.addf %39, %40 : vector<8x32xf32>
    %42 = math.tanh %41 : vector<8x32xf32>
    %43 = arith.mulf %38, %42 : vector<8x32xf32>
    %c0_i32 = arith.constant 0 : i32
    %44 = vector.broadcast %c0_i32 : i32 to vector<8x1xi32>
    %45 = arith.cmpi sle, %0, %44 : vector<8x1xi32>
    %c0_i32_13 = arith.constant 0 : i32
    %46 = vector.broadcast %c0_i32_13 : i32 to vector<8x1xi32>
    %47 = arith.cmpi sgt, %1, %46 : vector<8x1xi32>
    %48 = arith.andi %45, %47 : vector<8x1xi1>
    %49 = vector.shape_cast %48 : vector<8x1xi1> to vector<8x1xi1>
    %50 = vector.broadcast %49 : vector<8x1xi1> to vector<8x32xi1>
    %51 = arith.select %50, %41, %23 : vector<8x32xi1>, vector<8x32xf32>
    %52 = tpu.concatenate %43, %43 in 1 : vector<8x32xf32>, vector<8x32xf32> -> vector<8x64xf32>
    %53 = arith.mulf %52, %11 : vector<8x64xf32>
    %54 = vector.shape_cast %48 : vector<8x1xi1> to vector<8x1xi1>
    %55 = vector.broadcast %54 : vector<8x1xi1> to vector<8x64xi1>
    %56 = arith.select %55, %53, %22 : vector<8x64xi1>, vector<8x64xf32>
    %cst_14 = arith.constant 0.000000e+00 : f32
    %57 = vector.shape_cast %48 : vector<8x1xi1> to vector<8x1xi1>
    %58 = vector.broadcast %57 : vector<8x1xi1> to vector<8x32xi1>
    %59 = vector.broadcast %cst_14 : f32 to vector<8x32xf32>
    %60 = arith.select %58, %43, %59 : vector<8x32xi1>, vector<8x32xf32>
    %61 = arith.truncf %56 : vector<8x64xf32> to vector<8x64xbf16>
    %cst_15 = arith.constant dense<0.000000e+00> : vector<8x128xf32>
    %62 = tpu.matmul %61, %21, %cst_15 {dimension_numbers = #tpu.dot_dimension_numbers<[1], [0], [0], [1], [0, 0, 1, 1], [], []>} : vector<8x64xbf16>, vector<64x128xbf16>, vector<8x128xf32> -> vector<8x128xf32>
    %63 = arith.addf %14, %62 : vector<8x128xf32>
    %cst_16 = arith.constant 5.000000e-01 : f32
    %64 = vector.broadcast %cst_16 : f32 to vector<8x128xf32>
    %65 = arith.mulf %64, %63 : vector<8x128xf32>
    %66 = math.tanh %65 : vector<8x128xf32>
    %cst_17 = arith.constant 5.000000e-01 : f32
    %67 = vector.broadcast %cst_17 : f32 to vector<8x128xf32>
    %68 = arith.mulf %67, %66 : vector<8x128xf32>
    %cst_18 = arith.constant 5.000000e-01 : f32
    %69 = vector.broadcast %cst_18 : f32 to vector<8x128xf32>
    %70 = arith.addf %68, %69 : vector<8x128xf32>
    %71 = math.tanh %63 : vector<8x128xf32>
    %72 = vector.extract_strided_slice %70 {offsets = [0, 0], sizes = [8, 32], strides = [1, 1]} : vector<8x128xf32> to vector<8x32xf32>
    %73 = vector.extract_strided_slice %70 {offsets = [0, 32], sizes = [8, 32], strides = [1, 1]} : vector<8x128xf32> to vector<8x32xf32>
    %74 = vector.extract_strided_slice %71 {offsets = [0, 64], sizes = [8, 32], strides = [1, 1]} : vector<8x128xf32> to vector<8x32xf32>
    %75 = vector.extract_strided_slice %70 {offsets = [0, 96], sizes = [8, 32], strides = [1, 1]} : vector<8x128xf32> to vector<8x32xf32>
    %76 = arith.mulf %73, %51 : vector<8x32xf32>
    %77 = arith.mulf %72, %74 : vector<8x32xf32>
    %78 = arith.addf %76, %77 : vector<8x32xf32>
    %79 = math.tanh %78 : vector<8x32xf32>
    %80 = arith.mulf %75, %79 : vector<8x32xf32>
    %c1_i32 = arith.constant 1 : i32
    %81 = vector.broadcast %c1_i32 : i32 to vector<8x1xi32>
    %82 = arith.cmpi sle, %0, %81 : vector<8x1xi32>
    %c1_i32_19 = arith.constant 1 : i32
    %83 = vector.broadcast %c1_i32_19 : i32 to vector<8x1xi32>
    %84 = arith.cmpi sgt, %1, %83 : vector<8x1xi32>
    %85 = arith.andi %82, %84 : vector<8x1xi1>
    %86 = vector.shape_cast %85 : vector<8x1xi1> to vector<8x1xi1>
    %87 = vector.broadcast %86 : vector<8x1xi1> to vector<8x32xi1>
    %88 = arith.select %87, %78, %51 : vector<8x32xi1>, vector<8x32xf32>
    %89 = tpu.concatenate %80, %80 in 1 : vector<8x32xf32>, vector<8x32xf32> -> vector<8x64xf32>
    %90 = arith.mulf %89, %11 : vector<8x64xf32>
    %91 = vector.shape_cast %85 : vector<8x1xi1> to vector<8x1xi1>
    %92 = vector.broadcast %91 : vector<8x1xi1> to vector<8x64xi1>
    %93 = arith.select %92, %90, %56 : vector<8x64xi1>, vector<8x64xf32>
    %cst_20 = arith.constant 0.000000e+00 : f32
    %94 = vector.shape_cast %85 : vector<8x1xi1> to vector<8x1xi1>
    %95 = vector.broadcast %94 : vector<8x1xi1> to vector<8x32xi1>
    %96 = vector.broadcast %cst_20 : f32 to vector<8x32xf32>
    %97 = arith.select %95, %80, %96 : vector<8x32xi1>, vector<8x32xf32>
    %98 = arith.truncf %93 : vector<8x64xf32> to vector<8x64xbf16>
    %cst_21 = arith.constant dense<0.000000e+00> : vector<8x128xf32>
    %99 = tpu.matmul %98, %21, %cst_21 {dimension_numbers = #tpu.dot_dimension_numbers<[1], [0], [0], [1], [0, 0, 1, 1], [], []>} : vector<8x64xbf16>, vector<64x128xbf16>, vector<8x128xf32> -> vector<8x128xf32>
    %100 = arith.addf %15, %99 : vector<8x128xf32>
    %cst_22 = arith.constant 5.000000e-01 : f32
    %101 = vector.broadcast %cst_22 : f32 to vector<8x128xf32>
    %102 = arith.mulf %101, %100 : vector<8x128xf32>
    %103 = math.tanh %102 : vector<8x128xf32>
    %cst_23 = arith.constant 5.000000e-01 : f32
    %104 = vector.broadcast %cst_23 : f32 to vector<8x128xf32>
    %105 = arith.mulf %104, %103 : vector<8x128xf32>
    %cst_24 = arith.constant 5.000000e-01 : f32
    %106 = vector.broadcast %cst_24 : f32 to vector<8x128xf32>
    %107 = arith.addf %105, %106 : vector<8x128xf32>
    %108 = math.tanh %100 : vector<8x128xf32>
    %109 = vector.extract_strided_slice %107 {offsets = [0, 0], sizes = [8, 32], strides = [1, 1]} : vector<8x128xf32> to vector<8x32xf32>
    %110 = vector.extract_strided_slice %107 {offsets = [0, 32], sizes = [8, 32], strides = [1, 1]} : vector<8x128xf32> to vector<8x32xf32>
    %111 = vector.extract_strided_slice %108 {offsets = [0, 64], sizes = [8, 32], strides = [1, 1]} : vector<8x128xf32> to vector<8x32xf32>
    %112 = vector.extract_strided_slice %107 {offsets = [0, 96], sizes = [8, 32], strides = [1, 1]} : vector<8x128xf32> to vector<8x32xf32>
    %113 = arith.mulf %110, %88 : vector<8x32xf32>
    %114 = arith.mulf %109, %111 : vector<8x32xf32>
    %115 = arith.addf %113, %114 : vector<8x32xf32>
    %116 = math.tanh %115 : vector<8x32xf32>
    %117 = arith.mulf %112, %116 : vector<8x32xf32>
    %c2_i32 = arith.constant 2 : i32
    %118 = vector.broadcast %c2_i32 : i32 to vector<8x1xi32>
    %119 = arith.cmpi sle, %0, %118 : vector<8x1xi32>
    %c2_i32_25 = arith.constant 2 : i32
    %120 = vector.broadcast %c2_i32_25 : i32 to vector<8x1xi32>
    %121 = arith.cmpi sgt, %1, %120 : vector<8x1xi32>
    %122 = arith.andi %119, %121 : vector<8x1xi1>
    %123 = vector.shape_cast %122 : vector<8x1xi1> to vector<8x1xi1>
    %124 = vector.broadcast %123 : vector<8x1xi1> to vector<8x32xi1>
    %125 = arith.select %124, %115, %88 : vector<8x32xi1>, vector<8x32xf32>
    %126 = tpu.concatenate %117, %117 in 1 : vector<8x32xf32>, vector<8x32xf32> -> vector<8x64xf32>
    %127 = arith.mulf %126, %11 : vector<8x64xf32>
    %128 = vector.shape_cast %122 : vector<8x1xi1> to vector<8x1xi1>
    %129 = vector.broadcast %128 : vector<8x1xi1> to vector<8x64xi1>
    %130 = arith.select %129, %127, %93 : vector<8x64xi1>, vector<8x64xf32>
    %cst_26 = arith.constant 0.000000e+00 : f32
    %131 = vector.shape_cast %122 : vector<8x1xi1> to vector<8x1xi1>
    %132 = vector.broadcast %131 : vector<8x1xi1> to vector<8x32xi1>
    %133 = vector.broadcast %cst_26 : f32 to vector<8x32xf32>
    %134 = arith.select %132, %117, %133 : vector<8x32xi1>, vector<8x32xf32>
    %135 = arith.truncf %130 : vector<8x64xf32> to vector<8x64xbf16>
    %cst_27 = arith.constant dense<0.000000e+00> : vector<8x128xf32>
    %136 = tpu.matmul %135, %21, %cst_27 {dimension_numbers = #tpu.dot_dimension_numbers<[1], [0], [0], [1], [0, 0, 1, 1], [], []>} : vector<8x64xbf16>, vector<64x128xbf16>, vector<8x128xf32> -> vector<8x128xf32>
    %137 = arith.addf %16, %136 : vector<8x128xf32>
    %cst_28 = arith.constant 5.000000e-01 : f32
    %138 = vector.broadcast %cst_28 : f32 to vector<8x128xf32>
    %139 = arith.mulf %138, %137 : vector<8x128xf32>
    %140 = math.tanh %139 : vector<8x128xf32>
    %cst_29 = arith.constant 5.000000e-01 : f32
    %141 = vector.broadcast %cst_29 : f32 to vector<8x128xf32>
    %142 = arith.mulf %141, %140 : vector<8x128xf32>
    %cst_30 = arith.constant 5.000000e-01 : f32
    %143 = vector.broadcast %cst_30 : f32 to vector<8x128xf32>
    %144 = arith.addf %142, %143 : vector<8x128xf32>
    %145 = math.tanh %137 : vector<8x128xf32>
    %146 = vector.extract_strided_slice %144 {offsets = [0, 0], sizes = [8, 32], strides = [1, 1]} : vector<8x128xf32> to vector<8x32xf32>
    %147 = vector.extract_strided_slice %144 {offsets = [0, 32], sizes = [8, 32], strides = [1, 1]} : vector<8x128xf32> to vector<8x32xf32>
    %148 = vector.extract_strided_slice %145 {offsets = [0, 64], sizes = [8, 32], strides = [1, 1]} : vector<8x128xf32> to vector<8x32xf32>
    %149 = vector.extract_strided_slice %144 {offsets = [0, 96], sizes = [8, 32], strides = [1, 1]} : vector<8x128xf32> to vector<8x32xf32>
    %150 = arith.mulf %147, %125 : vector<8x32xf32>
    %151 = arith.mulf %146, %148 : vector<8x32xf32>
    %152 = arith.addf %150, %151 : vector<8x32xf32>
    %153 = math.tanh %152 : vector<8x32xf32>
    %154 = arith.mulf %149, %153 : vector<8x32xf32>
    %c3_i32 = arith.constant 3 : i32
    %155 = vector.broadcast %c3_i32 : i32 to vector<8x1xi32>
    %156 = arith.cmpi sle, %0, %155 : vector<8x1xi32>
    %c3_i32_31 = arith.constant 3 : i32
    %157 = vector.broadcast %c3_i32_31 : i32 to vector<8x1xi32>
    %158 = arith.cmpi sgt, %1, %157 : vector<8x1xi32>
    %159 = arith.andi %156, %158 : vector<8x1xi1>
    %160 = vector.shape_cast %159 : vector<8x1xi1> to vector<8x1xi1>
    %161 = vector.broadcast %160 : vector<8x1xi1> to vector<8x32xi1>
    %162 = arith.select %161, %152, %125 : vector<8x32xi1>, vector<8x32xf32>
    %163 = tpu.concatenate %154, %154 in 1 : vector<8x32xf32>, vector<8x32xf32> -> vector<8x64xf32>
    %164 = arith.mulf %163, %11 : vector<8x64xf32>
    %165 = vector.shape_cast %159 : vector<8x1xi1> to vector<8x1xi1>
    %166 = vector.broadcast %165 : vector<8x1xi1> to vector<8x64xi1>
    %167 = arith.select %166, %164, %130 : vector<8x64xi1>, vector<8x64xf32>
    %cst_32 = arith.constant 0.000000e+00 : f32
    %168 = vector.shape_cast %159 : vector<8x1xi1> to vector<8x1xi1>
    %169 = vector.broadcast %168 : vector<8x1xi1> to vector<8x32xi1>
    %170 = vector.broadcast %cst_32 : f32 to vector<8x32xf32>
    %171 = arith.select %169, %154, %170 : vector<8x32xi1>, vector<8x32xf32>
    %172 = arith.truncf %167 : vector<8x64xf32> to vector<8x64xbf16>
    %cst_33 = arith.constant dense<0.000000e+00> : vector<8x128xf32>
    %173 = tpu.matmul %172, %21, %cst_33 {dimension_numbers = #tpu.dot_dimension_numbers<[1], [0], [0], [1], [0, 0, 1, 1], [], []>} : vector<8x64xbf16>, vector<64x128xbf16>, vector<8x128xf32> -> vector<8x128xf32>
    %174 = arith.addf %17, %173 : vector<8x128xf32>
    %cst_34 = arith.constant 5.000000e-01 : f32
    %175 = vector.broadcast %cst_34 : f32 to vector<8x128xf32>
    %176 = arith.mulf %175, %174 : vector<8x128xf32>
    %177 = math.tanh %176 : vector<8x128xf32>
    %cst_35 = arith.constant 5.000000e-01 : f32
    %178 = vector.broadcast %cst_35 : f32 to vector<8x128xf32>
    %179 = arith.mulf %178, %177 : vector<8x128xf32>
    %cst_36 = arith.constant 5.000000e-01 : f32
    %180 = vector.broadcast %cst_36 : f32 to vector<8x128xf32>
    %181 = arith.addf %179, %180 : vector<8x128xf32>
    %182 = math.tanh %174 : vector<8x128xf32>
    %183 = vector.extract_strided_slice %181 {offsets = [0, 0], sizes = [8, 32], strides = [1, 1]} : vector<8x128xf32> to vector<8x32xf32>
    %184 = vector.extract_strided_slice %181 {offsets = [0, 32], sizes = [8, 32], strides = [1, 1]} : vector<8x128xf32> to vector<8x32xf32>
    %185 = vector.extract_strided_slice %182 {offsets = [0, 64], sizes = [8, 32], strides = [1, 1]} : vector<8x128xf32> to vector<8x32xf32>
    %186 = vector.extract_strided_slice %181 {offsets = [0, 96], sizes = [8, 32], strides = [1, 1]} : vector<8x128xf32> to vector<8x32xf32>
    %187 = arith.mulf %184, %162 : vector<8x32xf32>
    %188 = arith.mulf %183, %185 : vector<8x32xf32>
    %189 = arith.addf %187, %188 : vector<8x32xf32>
    %190 = math.tanh %189 : vector<8x32xf32>
    %191 = arith.mulf %186, %190 : vector<8x32xf32>
    %c4_i32_37 = arith.constant 4 : i32
    %192 = vector.broadcast %c4_i32_37 : i32 to vector<8x1xi32>
    %193 = arith.cmpi sle, %0, %192 : vector<8x1xi32>
    %c4_i32_38 = arith.constant 4 : i32
    %194 = vector.broadcast %c4_i32_38 : i32 to vector<8x1xi32>
    %195 = arith.cmpi sgt, %1, %194 : vector<8x1xi32>
    %196 = arith.andi %193, %195 : vector<8x1xi1>
    %197 = vector.shape_cast %196 : vector<8x1xi1> to vector<8x1xi1>
    %198 = vector.broadcast %197 : vector<8x1xi1> to vector<8x32xi1>
    %199 = arith.select %198, %189, %162 : vector<8x32xi1>, vector<8x32xf32>
    %200 = tpu.concatenate %191, %191 in 1 : vector<8x32xf32>, vector<8x32xf32> -> vector<8x64xf32>
    %201 = arith.mulf %200, %11 : vector<8x64xf32>
    %202 = vector.shape_cast %196 : vector<8x1xi1> to vector<8x1xi1>
    %203 = vector.broadcast %202 : vector<8x1xi1> to vector<8x64xi1>
    %204 = arith.select %203, %201, %167 : vector<8x64xi1>, vector<8x64xf32>
    %cst_39 = arith.constant 0.000000e+00 : f32
    %205 = vector.shape_cast %196 : vector<8x1xi1> to vector<8x1xi1>
    %206 = vector.broadcast %205 : vector<8x1xi1> to vector<8x32xi1>
    %207 = vector.broadcast %cst_39 : f32 to vector<8x32xf32>
    %208 = arith.select %206, %191, %207 : vector<8x32xi1>, vector<8x32xf32>
    %209 = arith.truncf %204 : vector<8x64xf32> to vector<8x64xbf16>
    %cst_40 = arith.constant dense<0.000000e+00> : vector<8x128xf32>
    %210 = tpu.matmul %209, %21, %cst_40 {dimension_numbers = #tpu.dot_dimension_numbers<[1], [0], [0], [1], [0, 0, 1, 1], [], []>} : vector<8x64xbf16>, vector<64x128xbf16>, vector<8x128xf32> -> vector<8x128xf32>
    %211 = arith.addf %18, %210 : vector<8x128xf32>
    %cst_41 = arith.constant 5.000000e-01 : f32
    %212 = vector.broadcast %cst_41 : f32 to vector<8x128xf32>
    %213 = arith.mulf %212, %211 : vector<8x128xf32>
    %214 = math.tanh %213 : vector<8x128xf32>
    %cst_42 = arith.constant 5.000000e-01 : f32
    %215 = vector.broadcast %cst_42 : f32 to vector<8x128xf32>
    %216 = arith.mulf %215, %214 : vector<8x128xf32>
    %cst_43 = arith.constant 5.000000e-01 : f32
    %217 = vector.broadcast %cst_43 : f32 to vector<8x128xf32>
    %218 = arith.addf %216, %217 : vector<8x128xf32>
    %219 = math.tanh %211 : vector<8x128xf32>
    %220 = vector.extract_strided_slice %218 {offsets = [0, 0], sizes = [8, 32], strides = [1, 1]} : vector<8x128xf32> to vector<8x32xf32>
    %221 = vector.extract_strided_slice %218 {offsets = [0, 32], sizes = [8, 32], strides = [1, 1]} : vector<8x128xf32> to vector<8x32xf32>
    %222 = vector.extract_strided_slice %219 {offsets = [0, 64], sizes = [8, 32], strides = [1, 1]} : vector<8x128xf32> to vector<8x32xf32>
    %223 = vector.extract_strided_slice %218 {offsets = [0, 96], sizes = [8, 32], strides = [1, 1]} : vector<8x128xf32> to vector<8x32xf32>
    %224 = arith.mulf %221, %199 : vector<8x32xf32>
    %225 = arith.mulf %220, %222 : vector<8x32xf32>
    %226 = arith.addf %224, %225 : vector<8x32xf32>
    %227 = math.tanh %226 : vector<8x32xf32>
    %228 = arith.mulf %223, %227 : vector<8x32xf32>
    %c5_i32 = arith.constant 5 : i32
    %229 = vector.broadcast %c5_i32 : i32 to vector<8x1xi32>
    %230 = arith.cmpi sle, %0, %229 : vector<8x1xi32>
    %c5_i32_44 = arith.constant 5 : i32
    %231 = vector.broadcast %c5_i32_44 : i32 to vector<8x1xi32>
    %232 = arith.cmpi sgt, %1, %231 : vector<8x1xi32>
    %233 = arith.andi %230, %232 : vector<8x1xi1>
    %234 = vector.shape_cast %233 : vector<8x1xi1> to vector<8x1xi1>
    %235 = vector.broadcast %234 : vector<8x1xi1> to vector<8x32xi1>
    %236 = arith.select %235, %226, %199 : vector<8x32xi1>, vector<8x32xf32>
    %237 = tpu.concatenate %228, %228 in 1 : vector<8x32xf32>, vector<8x32xf32> -> vector<8x64xf32>
    %238 = arith.mulf %237, %11 : vector<8x64xf32>
    %239 = vector.shape_cast %233 : vector<8x1xi1> to vector<8x1xi1>
    %240 = vector.broadcast %239 : vector<8x1xi1> to vector<8x64xi1>
    %241 = arith.select %240, %238, %204 : vector<8x64xi1>, vector<8x64xf32>
    %cst_45 = arith.constant 0.000000e+00 : f32
    %242 = vector.shape_cast %233 : vector<8x1xi1> to vector<8x1xi1>
    %243 = vector.broadcast %242 : vector<8x1xi1> to vector<8x32xi1>
    %244 = vector.broadcast %cst_45 : f32 to vector<8x32xf32>
    %245 = arith.select %243, %228, %244 : vector<8x32xi1>, vector<8x32xf32>
    %246 = arith.truncf %241 : vector<8x64xf32> to vector<8x64xbf16>
    %cst_46 = arith.constant dense<0.000000e+00> : vector<8x128xf32>
    %247 = tpu.matmul %246, %21, %cst_46 {dimension_numbers = #tpu.dot_dimension_numbers<[1], [0], [0], [1], [0, 0, 1, 1], [], []>} : vector<8x64xbf16>, vector<64x128xbf16>, vector<8x128xf32> -> vector<8x128xf32>
    %248 = arith.addf %19, %247 : vector<8x128xf32>
    %cst_47 = arith.constant 5.000000e-01 : f32
    %249 = vector.broadcast %cst_47 : f32 to vector<8x128xf32>
    %250 = arith.mulf %249, %248 : vector<8x128xf32>
    %251 = math.tanh %250 : vector<8x128xf32>
    %cst_48 = arith.constant 5.000000e-01 : f32
    %252 = vector.broadcast %cst_48 : f32 to vector<8x128xf32>
    %253 = arith.mulf %252, %251 : vector<8x128xf32>
    %cst_49 = arith.constant 5.000000e-01 : f32
    %254 = vector.broadcast %cst_49 : f32 to vector<8x128xf32>
    %255 = arith.addf %253, %254 : vector<8x128xf32>
    %256 = math.tanh %248 : vector<8x128xf32>
    %257 = vector.extract_strided_slice %255 {offsets = [0, 0], sizes = [8, 32], strides = [1, 1]} : vector<8x128xf32> to vector<8x32xf32>
    %258 = vector.extract_strided_slice %255 {offsets = [0, 32], sizes = [8, 32], strides = [1, 1]} : vector<8x128xf32> to vector<8x32xf32>
    %259 = vector.extract_strided_slice %256 {offsets = [0, 64], sizes = [8, 32], strides = [1, 1]} : vector<8x128xf32> to vector<8x32xf32>
    %260 = vector.extract_strided_slice %255 {offsets = [0, 96], sizes = [8, 32], strides = [1, 1]} : vector<8x128xf32> to vector<8x32xf32>
    %261 = arith.mulf %258, %236 : vector<8x32xf32>
    %262 = arith.mulf %257, %259 : vector<8x32xf32>
    %263 = arith.addf %261, %262 : vector<8x32xf32>
    %264 = math.tanh %263 : vector<8x32xf32>
    %265 = arith.mulf %260, %264 : vector<8x32xf32>
    %c6_i32 = arith.constant 6 : i32
    %266 = vector.broadcast %c6_i32 : i32 to vector<8x1xi32>
    %267 = arith.cmpi sle, %0, %266 : vector<8x1xi32>
    %c6_i32_50 = arith.constant 6 : i32
    %268 = vector.broadcast %c6_i32_50 : i32 to vector<8x1xi32>
    %269 = arith.cmpi sgt, %1, %268 : vector<8x1xi32>
    %270 = arith.andi %267, %269 : vector<8x1xi1>
    %271 = vector.shape_cast %270 : vector<8x1xi1> to vector<8x1xi1>
    %272 = vector.broadcast %271 : vector<8x1xi1> to vector<8x32xi1>
    %273 = arith.select %272, %263, %236 : vector<8x32xi1>, vector<8x32xf32>
    %274 = tpu.concatenate %265, %265 in 1 : vector<8x32xf32>, vector<8x32xf32> -> vector<8x64xf32>
    %275 = arith.mulf %274, %11 : vector<8x64xf32>
    %276 = vector.shape_cast %270 : vector<8x1xi1> to vector<8x1xi1>
    %277 = vector.broadcast %276 : vector<8x1xi1> to vector<8x64xi1>
    %278 = arith.select %277, %275, %241 : vector<8x64xi1>, vector<8x64xf32>
    %cst_51 = arith.constant 0.000000e+00 : f32
    %279 = vector.shape_cast %270 : vector<8x1xi1> to vector<8x1xi1>
    %280 = vector.broadcast %279 : vector<8x1xi1> to vector<8x32xi1>
    %281 = vector.broadcast %cst_51 : f32 to vector<8x32xf32>
    %282 = arith.select %280, %265, %281 : vector<8x32xi1>, vector<8x32xf32>
    %283 = arith.truncf %278 : vector<8x64xf32> to vector<8x64xbf16>
    %cst_52 = arith.constant dense<0.000000e+00> : vector<8x128xf32>
    %284 = tpu.matmul %283, %21, %cst_52 {dimension_numbers = #tpu.dot_dimension_numbers<[1], [0], [0], [1], [0, 0, 1, 1], [], []>} : vector<8x64xbf16>, vector<64x128xbf16>, vector<8x128xf32> -> vector<8x128xf32>
    %285 = arith.addf %20, %284 : vector<8x128xf32>
    %cst_53 = arith.constant 5.000000e-01 : f32
    %286 = vector.broadcast %cst_53 : f32 to vector<8x128xf32>
    %287 = arith.mulf %286, %285 : vector<8x128xf32>
    %288 = math.tanh %287 : vector<8x128xf32>
    %cst_54 = arith.constant 5.000000e-01 : f32
    %289 = vector.broadcast %cst_54 : f32 to vector<8x128xf32>
    %290 = arith.mulf %289, %288 : vector<8x128xf32>
    %cst_55 = arith.constant 5.000000e-01 : f32
    %291 = vector.broadcast %cst_55 : f32 to vector<8x128xf32>
    %292 = arith.addf %290, %291 : vector<8x128xf32>
    %293 = math.tanh %285 : vector<8x128xf32>
    %294 = vector.extract_strided_slice %292 {offsets = [0, 0], sizes = [8, 32], strides = [1, 1]} : vector<8x128xf32> to vector<8x32xf32>
    %295 = vector.extract_strided_slice %292 {offsets = [0, 32], sizes = [8, 32], strides = [1, 1]} : vector<8x128xf32> to vector<8x32xf32>
    %296 = vector.extract_strided_slice %293 {offsets = [0, 64], sizes = [8, 32], strides = [1, 1]} : vector<8x128xf32> to vector<8x32xf32>
    %297 = vector.extract_strided_slice %292 {offsets = [0, 96], sizes = [8, 32], strides = [1, 1]} : vector<8x128xf32> to vector<8x32xf32>
    %298 = arith.mulf %295, %273 : vector<8x32xf32>
    %299 = arith.mulf %294, %296 : vector<8x32xf32>
    %300 = arith.addf %298, %299 : vector<8x32xf32>
    %301 = math.tanh %300 : vector<8x32xf32>
    %302 = arith.mulf %297, %301 : vector<8x32xf32>
    %c7_i32 = arith.constant 7 : i32
    %303 = vector.broadcast %c7_i32 : i32 to vector<8x1xi32>
    %304 = arith.cmpi sle, %0, %303 : vector<8x1xi32>
    %c7_i32_56 = arith.constant 7 : i32
    %305 = vector.broadcast %c7_i32_56 : i32 to vector<8x1xi32>
    %306 = arith.cmpi sgt, %1, %305 : vector<8x1xi32>
    %307 = arith.andi %304, %306 : vector<8x1xi1>
    %cst_57 = arith.constant 0.000000e+00 : f32
    %308 = vector.shape_cast %307 : vector<8x1xi1> to vector<8x1xi1>
    %309 = vector.broadcast %308 : vector<8x1xi1> to vector<8x32xi1>
    %310 = vector.broadcast %cst_57 : f32 to vector<8x32xf32>
    %311 = arith.select %309, %302, %310 : vector<8x32xi1>, vector<8x32xf32>
    %312 = vector.extract_strided_slice %60 {offsets = [0, 0], sizes = [4, 32], strides = [1, 1]} : vector<8x32xf32> to vector<4x32xf32>
    %313 = vector.extract_strided_slice %311 {offsets = [4, 0], sizes = [4, 32], strides = [1, 1]} : vector<8x32xf32> to vector<4x32xf32>
    %314 = tpu.concatenate %312, %313 in 1 : vector<4x32xf32>, vector<4x32xf32> -> vector<4x64xf32>
    %315 = vector.extract_strided_slice %97 {offsets = [0, 0], sizes = [4, 32], strides = [1, 1]} : vector<8x32xf32> to vector<4x32xf32>
    %316 = vector.extract_strided_slice %282 {offsets = [4, 0], sizes = [4, 32], strides = [1, 1]} : vector<8x32xf32> to vector<4x32xf32>
    %317 = tpu.concatenate %315, %316 in 1 : vector<4x32xf32>, vector<4x32xf32> -> vector<4x64xf32>
    %318 = vector.extract_strided_slice %134 {offsets = [0, 0], sizes = [4, 32], strides = [1, 1]} : vector<8x32xf32> to vector<4x32xf32>
    %319 = vector.extract_strided_slice %245 {offsets = [4, 0], sizes = [4, 32], strides = [1, 1]} : vector<8x32xf32> to vector<4x32xf32>
    %320 = tpu.concatenate %318, %319 in 1 : vector<4x32xf32>, vector<4x32xf32> -> vector<4x64xf32>
    %321 = vector.extract_strided_slice %171 {offsets = [0, 0], sizes = [4, 32], strides = [1, 1]} : vector<8x32xf32> to vector<4x32xf32>
    %322 = vector.extract_strided_slice %208 {offsets = [4, 0], sizes = [4, 32], strides = [1, 1]} : vector<8x32xf32> to vector<4x32xf32>
    %323 = tpu.concatenate %321, %322 in 1 : vector<4x32xf32>, vector<4x32xf32> -> vector<4x64xf32>
    %324 = vector.extract_strided_slice %208 {offsets = [0, 0], sizes = [4, 32], strides = [1, 1]} : vector<8x32xf32> to vector<4x32xf32>
    %325 = vector.extract_strided_slice %171 {offsets = [4, 0], sizes = [4, 32], strides = [1, 1]} : vector<8x32xf32> to vector<4x32xf32>
    %326 = tpu.concatenate %324, %325 in 1 : vector<4x32xf32>, vector<4x32xf32> -> vector<4x64xf32>
    %327 = vector.extract_strided_slice %245 {offsets = [0, 0], sizes = [4, 32], strides = [1, 1]} : vector<8x32xf32> to vector<4x32xf32>
    %328 = vector.extract_strided_slice %134 {offsets = [4, 0], sizes = [4, 32], strides = [1, 1]} : vector<8x32xf32> to vector<4x32xf32>
    %329 = tpu.concatenate %327, %328 in 1 : vector<4x32xf32>, vector<4x32xf32> -> vector<4x64xf32>
    %330 = vector.extract_strided_slice %282 {offsets = [0, 0], sizes = [4, 32], strides = [1, 1]} : vector<8x32xf32> to vector<4x32xf32>
    %331 = vector.extract_strided_slice %97 {offsets = [4, 0], sizes = [4, 32], strides = [1, 1]} : vector<8x32xf32> to vector<4x32xf32>
    %332 = tpu.concatenate %330, %331 in 1 : vector<4x32xf32>, vector<4x32xf32> -> vector<4x64xf32>
    %333 = vector.extract_strided_slice %311 {offsets = [0, 0], sizes = [4, 32], strides = [1, 1]} : vector<8x32xf32> to vector<4x32xf32>
    %334 = vector.extract_strided_slice %60 {offsets = [4, 0], sizes = [4, 32], strides = [1, 1]} : vector<8x32xf32> to vector<4x32xf32>
    %335 = tpu.concatenate %333, %334 in 1 : vector<4x32xf32>, vector<4x32xf32> -> vector<4x64xf32>
    %336 = tpu.concatenate %314, %317, %320, %323, %326, %329, %332, %335 in 0 : vector<4x64xf32>, vector<4x64xf32>, vector<4x64xf32>, vector<4x64xf32>, vector<4x64xf32>, vector<4x64xf32>, vector<4x64xf32>, vector<4x64xf32> -> vector<32x64xf32>
    %337 = arith.truncf %336 : vector<32x64xf32> to vector<32x64xbf16>
    %c0_58 = arith.constant 0 : index
    %c0_59 = arith.constant 0 : index
    %338 = vector.load %arg4[%c0_58, %c0_59] : memref<64x256xbf16, #tpu.memory_space<vmem>>, vector<64x256xbf16>
    %cst_60 = arith.constant dense<0.000000e+00> : vector<32x256xf32>
    %339 = tpu.matmul %337, %338, %cst_60 {dimension_numbers = #tpu.dot_dimension_numbers<[1], [0], [0], [1], [0, 0, 1, 1], [], []>} : vector<32x64xbf16>, vector<64x256xbf16>, vector<32x256xf32> -> vector<32x256xf32>
    %c0_61 = arith.constant 0 : index
    %c0_62 = arith.constant 0 : index
    %340 = vector.load %arg5[%c0_61, %c0_62] : memref<1x256xf32, #tpu.memory_space<vmem>>, vector<1x256xf32>
    %341 = vector.broadcast %340 : vector<1x256xf32> to vector<32x256xf32>
    %342 = arith.addf %339, %341 : vector<32x256xf32>
    %343 = vector.extract_strided_slice %342 {offsets = [0, 0], sizes = [32, 128], strides = [1, 1]} : vector<32x256xf32> to vector<32x128xf32>
    %344 = vector.extract_strided_slice %342 {offsets = [0, 128], sizes = [32, 128], strides = [1, 1]} : vector<32x256xf32> to vector<32x128xf32>
    %345 = vector.extract_strided_slice %343 {offsets = [0, 0], sizes = [4, 128], strides = [1, 1]} : vector<32x128xf32> to vector<4x128xf32>
    %346 = vector.extract_strided_slice %344 {offsets = [28, 0], sizes = [4, 128], strides = [1, 1]} : vector<32x128xf32> to vector<4x128xf32>
    %347 = tpu.concatenate %345, %346 in 0 : vector<4x128xf32>, vector<4x128xf32> -> vector<8x128xf32>
    %348 = vector.extract_strided_slice %343 {offsets = [4, 0], sizes = [4, 128], strides = [1, 1]} : vector<32x128xf32> to vector<4x128xf32>
    %349 = vector.extract_strided_slice %344 {offsets = [24, 0], sizes = [4, 128], strides = [1, 1]} : vector<32x128xf32> to vector<4x128xf32>
    %350 = tpu.concatenate %348, %349 in 0 : vector<4x128xf32>, vector<4x128xf32> -> vector<8x128xf32>
    %351 = vector.extract_strided_slice %343 {offsets = [8, 0], sizes = [4, 128], strides = [1, 1]} : vector<32x128xf32> to vector<4x128xf32>
    %352 = vector.extract_strided_slice %344 {offsets = [20, 0], sizes = [4, 128], strides = [1, 1]} : vector<32x128xf32> to vector<4x128xf32>
    %353 = tpu.concatenate %351, %352 in 0 : vector<4x128xf32>, vector<4x128xf32> -> vector<8x128xf32>
    %354 = vector.extract_strided_slice %343 {offsets = [12, 0], sizes = [4, 128], strides = [1, 1]} : vector<32x128xf32> to vector<4x128xf32>
    %355 = vector.extract_strided_slice %344 {offsets = [16, 0], sizes = [4, 128], strides = [1, 1]} : vector<32x128xf32> to vector<4x128xf32>
    %356 = tpu.concatenate %354, %355 in 0 : vector<4x128xf32>, vector<4x128xf32> -> vector<8x128xf32>
    %357 = vector.extract_strided_slice %343 {offsets = [16, 0], sizes = [4, 128], strides = [1, 1]} : vector<32x128xf32> to vector<4x128xf32>
    %358 = vector.extract_strided_slice %344 {offsets = [12, 0], sizes = [4, 128], strides = [1, 1]} : vector<32x128xf32> to vector<4x128xf32>
    %359 = tpu.concatenate %357, %358 in 0 : vector<4x128xf32>, vector<4x128xf32> -> vector<8x128xf32>
    %360 = vector.extract_strided_slice %343 {offsets = [20, 0], sizes = [4, 128], strides = [1, 1]} : vector<32x128xf32> to vector<4x128xf32>
    %361 = vector.extract_strided_slice %344 {offsets = [8, 0], sizes = [4, 128], strides = [1, 1]} : vector<32x128xf32> to vector<4x128xf32>
    %362 = tpu.concatenate %360, %361 in 0 : vector<4x128xf32>, vector<4x128xf32> -> vector<8x128xf32>
    %363 = vector.extract_strided_slice %343 {offsets = [24, 0], sizes = [4, 128], strides = [1, 1]} : vector<32x128xf32> to vector<4x128xf32>
    %364 = vector.extract_strided_slice %344 {offsets = [4, 0], sizes = [4, 128], strides = [1, 1]} : vector<32x128xf32> to vector<4x128xf32>
    %365 = tpu.concatenate %363, %364 in 0 : vector<4x128xf32>, vector<4x128xf32> -> vector<8x128xf32>
    %366 = vector.extract_strided_slice %343 {offsets = [28, 0], sizes = [4, 128], strides = [1, 1]} : vector<32x128xf32> to vector<4x128xf32>
    %367 = vector.extract_strided_slice %344 {offsets = [0, 0], sizes = [4, 128], strides = [1, 1]} : vector<32x128xf32> to vector<4x128xf32>
    %368 = tpu.concatenate %366, %367 in 0 : vector<4x128xf32>, vector<4x128xf32> -> vector<8x128xf32>
    %c0_63 = arith.constant 0 : index
    %c0_64 = arith.constant 0 : index
    %369 = vector.load %arg6[%c0_63, %c0_64] : memref<64x128xbf16, #tpu.memory_space<vmem>>, vector<64x128xbf16>
    %cst_65 = arith.constant 0.000000e+00 : f32
    %370 = vector.broadcast %cst_65 : f32 to vector<8x64xf32>
    %cst_66 = arith.constant 0.000000e+00 : f32
    %371 = vector.broadcast %cst_66 : f32 to vector<8x32xf32>
    %372 = arith.truncf %370 : vector<8x64xf32> to vector<8x64xbf16>
    %cst_67 = arith.constant dense<0.000000e+00> : vector<8x128xf32>
    %373 = tpu.matmul %372, %369, %cst_67 {dimension_numbers = #tpu.dot_dimension_numbers<[1], [0], [0], [1], [0, 0, 1, 1], [], []>} : vector<8x64xbf16>, vector<64x128xbf16>, vector<8x128xf32> -> vector<8x128xf32>
    %374 = arith.addf %347, %373 : vector<8x128xf32>
    %cst_68 = arith.constant 5.000000e-01 : f32
    %375 = vector.broadcast %cst_68 : f32 to vector<8x128xf32>
    %376 = arith.mulf %375, %374 : vector<8x128xf32>
    %377 = math.tanh %376 : vector<8x128xf32>
    %cst_69 = arith.constant 5.000000e-01 : f32
    %378 = vector.broadcast %cst_69 : f32 to vector<8x128xf32>
    %379 = arith.mulf %378, %377 : vector<8x128xf32>
    %cst_70 = arith.constant 5.000000e-01 : f32
    %380 = vector.broadcast %cst_70 : f32 to vector<8x128xf32>
    %381 = arith.addf %379, %380 : vector<8x128xf32>
    %382 = math.tanh %374 : vector<8x128xf32>
    %383 = vector.extract_strided_slice %381 {offsets = [0, 0], sizes = [8, 32], strides = [1, 1]} : vector<8x128xf32> to vector<8x32xf32>
    %384 = vector.extract_strided_slice %381 {offsets = [0, 32], sizes = [8, 32], strides = [1, 1]} : vector<8x128xf32> to vector<8x32xf32>
    %385 = vector.extract_strided_slice %382 {offsets = [0, 64], sizes = [8, 32], strides = [1, 1]} : vector<8x128xf32> to vector<8x32xf32>
    %386 = vector.extract_strided_slice %381 {offsets = [0, 96], sizes = [8, 32], strides = [1, 1]} : vector<8x128xf32> to vector<8x32xf32>
    %387 = arith.mulf %384, %371 : vector<8x32xf32>
    %388 = arith.mulf %383, %385 : vector<8x32xf32>
    %389 = arith.addf %387, %388 : vector<8x32xf32>
    %390 = math.tanh %389 : vector<8x32xf32>
    %391 = arith.mulf %386, %390 : vector<8x32xf32>
    %c0_i32_71 = arith.constant 0 : i32
    %392 = vector.broadcast %c0_i32_71 : i32 to vector<8x1xi32>
    %393 = arith.cmpi sle, %0, %392 : vector<8x1xi32>
    %c0_i32_72 = arith.constant 0 : i32
    %394 = vector.broadcast %c0_i32_72 : i32 to vector<8x1xi32>
    %395 = arith.cmpi sgt, %1, %394 : vector<8x1xi32>
    %396 = arith.andi %393, %395 : vector<8x1xi1>
    %397 = vector.shape_cast %396 : vector<8x1xi1> to vector<8x1xi1>
    %398 = vector.broadcast %397 : vector<8x1xi1> to vector<8x32xi1>
    %399 = arith.select %398, %389, %371 : vector<8x32xi1>, vector<8x32xf32>
    %400 = tpu.concatenate %391, %391 in 1 : vector<8x32xf32>, vector<8x32xf32> -> vector<8x64xf32>
    %401 = arith.mulf %400, %11 : vector<8x64xf32>
    %402 = vector.shape_cast %396 : vector<8x1xi1> to vector<8x1xi1>
    %403 = vector.broadcast %402 : vector<8x1xi1> to vector<8x64xi1>
    %404 = arith.select %403, %401, %370 : vector<8x64xi1>, vector<8x64xf32>
    %405 = arith.truncf %404 : vector<8x64xf32> to vector<8x64xbf16>
    %cst_73 = arith.constant dense<0.000000e+00> : vector<8x128xf32>
    %406 = tpu.matmul %405, %369, %cst_73 {dimension_numbers = #tpu.dot_dimension_numbers<[1], [0], [0], [1], [0, 0, 1, 1], [], []>} : vector<8x64xbf16>, vector<64x128xbf16>, vector<8x128xf32> -> vector<8x128xf32>
    %407 = arith.addf %350, %406 : vector<8x128xf32>
    %cst_74 = arith.constant 5.000000e-01 : f32
    %408 = vector.broadcast %cst_74 : f32 to vector<8x128xf32>
    %409 = arith.mulf %408, %407 : vector<8x128xf32>
    %410 = math.tanh %409 : vector<8x128xf32>
    %cst_75 = arith.constant 5.000000e-01 : f32
    %411 = vector.broadcast %cst_75 : f32 to vector<8x128xf32>
    %412 = arith.mulf %411, %410 : vector<8x128xf32>
    %cst_76 = arith.constant 5.000000e-01 : f32
    %413 = vector.broadcast %cst_76 : f32 to vector<8x128xf32>
    %414 = arith.addf %412, %413 : vector<8x128xf32>
    %415 = math.tanh %407 : vector<8x128xf32>
    %416 = vector.extract_strided_slice %414 {offsets = [0, 0], sizes = [8, 32], strides = [1, 1]} : vector<8x128xf32> to vector<8x32xf32>
    %417 = vector.extract_strided_slice %414 {offsets = [0, 32], sizes = [8, 32], strides = [1, 1]} : vector<8x128xf32> to vector<8x32xf32>
    %418 = vector.extract_strided_slice %415 {offsets = [0, 64], sizes = [8, 32], strides = [1, 1]} : vector<8x128xf32> to vector<8x32xf32>
    %419 = vector.extract_strided_slice %414 {offsets = [0, 96], sizes = [8, 32], strides = [1, 1]} : vector<8x128xf32> to vector<8x32xf32>
    %420 = arith.mulf %417, %399 : vector<8x32xf32>
    %421 = arith.mulf %416, %418 : vector<8x32xf32>
    %422 = arith.addf %420, %421 : vector<8x32xf32>
    %423 = math.tanh %422 : vector<8x32xf32>
    %424 = arith.mulf %419, %423 : vector<8x32xf32>
    %c1_i32_77 = arith.constant 1 : i32
    %425 = vector.broadcast %c1_i32_77 : i32 to vector<8x1xi32>
    %426 = arith.cmpi sle, %0, %425 : vector<8x1xi32>
    %c1_i32_78 = arith.constant 1 : i32
    %427 = vector.broadcast %c1_i32_78 : i32 to vector<8x1xi32>
    %428 = arith.cmpi sgt, %1, %427 : vector<8x1xi32>
    %429 = arith.andi %426, %428 : vector<8x1xi1>
    %430 = vector.shape_cast %429 : vector<8x1xi1> to vector<8x1xi1>
    %431 = vector.broadcast %430 : vector<8x1xi1> to vector<8x32xi1>
    %432 = arith.select %431, %422, %399 : vector<8x32xi1>, vector<8x32xf32>
    %433 = tpu.concatenate %424, %424 in 1 : vector<8x32xf32>, vector<8x32xf32> -> vector<8x64xf32>
    %434 = arith.mulf %433, %11 : vector<8x64xf32>
    %435 = vector.shape_cast %429 : vector<8x1xi1> to vector<8x1xi1>
    %436 = vector.broadcast %435 : vector<8x1xi1> to vector<8x64xi1>
    %437 = arith.select %436, %434, %404 : vector<8x64xi1>, vector<8x64xf32>
    %438 = arith.truncf %437 : vector<8x64xf32> to vector<8x64xbf16>
    %cst_79 = arith.constant dense<0.000000e+00> : vector<8x128xf32>
    %439 = tpu.matmul %438, %369, %cst_79 {dimension_numbers = #tpu.dot_dimension_numbers<[1], [0], [0], [1], [0, 0, 1, 1], [], []>} : vector<8x64xbf16>, vector<64x128xbf16>, vector<8x128xf32> -> vector<8x128xf32>
    %440 = arith.addf %353, %439 : vector<8x128xf32>
    %cst_80 = arith.constant 5.000000e-01 : f32
    %441 = vector.broadcast %cst_80 : f32 to vector<8x128xf32>
    %442 = arith.mulf %441, %440 : vector<8x128xf32>
    %443 = math.tanh %442 : vector<8x128xf32>
    %cst_81 = arith.constant 5.000000e-01 : f32
    %444 = vector.broadcast %cst_81 : f32 to vector<8x128xf32>
    %445 = arith.mulf %444, %443 : vector<8x128xf32>
    %cst_82 = arith.constant 5.000000e-01 : f32
    %446 = vector.broadcast %cst_82 : f32 to vector<8x128xf32>
    %447 = arith.addf %445, %446 : vector<8x128xf32>
    %448 = math.tanh %440 : vector<8x128xf32>
    %449 = vector.extract_strided_slice %447 {offsets = [0, 0], sizes = [8, 32], strides = [1, 1]} : vector<8x128xf32> to vector<8x32xf32>
    %450 = vector.extract_strided_slice %447 {offsets = [0, 32], sizes = [8, 32], strides = [1, 1]} : vector<8x128xf32> to vector<8x32xf32>
    %451 = vector.extract_strided_slice %448 {offsets = [0, 64], sizes = [8, 32], strides = [1, 1]} : vector<8x128xf32> to vector<8x32xf32>
    %452 = vector.extract_strided_slice %447 {offsets = [0, 96], sizes = [8, 32], strides = [1, 1]} : vector<8x128xf32> to vector<8x32xf32>
    %453 = arith.mulf %450, %432 : vector<8x32xf32>
    %454 = arith.mulf %449, %451 : vector<8x32xf32>
    %455 = arith.addf %453, %454 : vector<8x32xf32>
    %456 = math.tanh %455 : vector<8x32xf32>
    %457 = arith.mulf %452, %456 : vector<8x32xf32>
    %c2_i32_83 = arith.constant 2 : i32
    %458 = vector.broadcast %c2_i32_83 : i32 to vector<8x1xi32>
    %459 = arith.cmpi sle, %0, %458 : vector<8x1xi32>
    %c2_i32_84 = arith.constant 2 : i32
    %460 = vector.broadcast %c2_i32_84 : i32 to vector<8x1xi32>
    %461 = arith.cmpi sgt, %1, %460 : vector<8x1xi32>
    %462 = arith.andi %459, %461 : vector<8x1xi1>
    %463 = vector.shape_cast %462 : vector<8x1xi1> to vector<8x1xi1>
    %464 = vector.broadcast %463 : vector<8x1xi1> to vector<8x32xi1>
    %465 = arith.select %464, %455, %432 : vector<8x32xi1>, vector<8x32xf32>
    %466 = tpu.concatenate %457, %457 in 1 : vector<8x32xf32>, vector<8x32xf32> -> vector<8x64xf32>
    %467 = arith.mulf %466, %11 : vector<8x64xf32>
    %468 = vector.shape_cast %462 : vector<8x1xi1> to vector<8x1xi1>
    %469 = vector.broadcast %468 : vector<8x1xi1> to vector<8x64xi1>
    %470 = arith.select %469, %467, %437 : vector<8x64xi1>, vector<8x64xf32>
    %471 = arith.truncf %470 : vector<8x64xf32> to vector<8x64xbf16>
    %cst_85 = arith.constant dense<0.000000e+00> : vector<8x128xf32>
    %472 = tpu.matmul %471, %369, %cst_85 {dimension_numbers = #tpu.dot_dimension_numbers<[1], [0], [0], [1], [0, 0, 1, 1], [], []>} : vector<8x64xbf16>, vector<64x128xbf16>, vector<8x128xf32> -> vector<8x128xf32>
    %473 = arith.addf %356, %472 : vector<8x128xf32>
    %cst_86 = arith.constant 5.000000e-01 : f32
    %474 = vector.broadcast %cst_86 : f32 to vector<8x128xf32>
    %475 = arith.mulf %474, %473 : vector<8x128xf32>
    %476 = math.tanh %475 : vector<8x128xf32>
    %cst_87 = arith.constant 5.000000e-01 : f32
    %477 = vector.broadcast %cst_87 : f32 to vector<8x128xf32>
    %478 = arith.mulf %477, %476 : vector<8x128xf32>
    %cst_88 = arith.constant 5.000000e-01 : f32
    %479 = vector.broadcast %cst_88 : f32 to vector<8x128xf32>
    %480 = arith.addf %478, %479 : vector<8x128xf32>
    %481 = math.tanh %473 : vector<8x128xf32>
    %482 = vector.extract_strided_slice %480 {offsets = [0, 0], sizes = [8, 32], strides = [1, 1]} : vector<8x128xf32> to vector<8x32xf32>
    %483 = vector.extract_strided_slice %480 {offsets = [0, 32], sizes = [8, 32], strides = [1, 1]} : vector<8x128xf32> to vector<8x32xf32>
    %484 = vector.extract_strided_slice %481 {offsets = [0, 64], sizes = [8, 32], strides = [1, 1]} : vector<8x128xf32> to vector<8x32xf32>
    %485 = vector.extract_strided_slice %480 {offsets = [0, 96], sizes = [8, 32], strides = [1, 1]} : vector<8x128xf32> to vector<8x32xf32>
    %486 = arith.mulf %483, %465 : vector<8x32xf32>
    %487 = arith.mulf %482, %484 : vector<8x32xf32>
    %488 = arith.addf %486, %487 : vector<8x32xf32>
    %489 = math.tanh %488 : vector<8x32xf32>
    %490 = arith.mulf %485, %489 : vector<8x32xf32>
    %c3_i32_89 = arith.constant 3 : i32
    %491 = vector.broadcast %c3_i32_89 : i32 to vector<8x1xi32>
    %492 = arith.cmpi sle, %0, %491 : vector<8x1xi32>
    %c3_i32_90 = arith.constant 3 : i32
    %493 = vector.broadcast %c3_i32_90 : i32 to vector<8x1xi32>
    %494 = arith.cmpi sgt, %1, %493 : vector<8x1xi32>
    %495 = arith.andi %492, %494 : vector<8x1xi1>
    %496 = vector.shape_cast %495 : vector<8x1xi1> to vector<8x1xi1>
    %497 = vector.broadcast %496 : vector<8x1xi1> to vector<8x32xi1>
    %498 = arith.select %497, %488, %465 : vector<8x32xi1>, vector<8x32xf32>
    %499 = tpu.concatenate %490, %490 in 1 : vector<8x32xf32>, vector<8x32xf32> -> vector<8x64xf32>
    %500 = arith.mulf %499, %11 : vector<8x64xf32>
    %501 = vector.shape_cast %495 : vector<8x1xi1> to vector<8x1xi1>
    %502 = vector.broadcast %501 : vector<8x1xi1> to vector<8x64xi1>
    %503 = arith.select %502, %500, %470 : vector<8x64xi1>, vector<8x64xf32>
    %504 = arith.truncf %503 : vector<8x64xf32> to vector<8x64xbf16>
    %cst_91 = arith.constant dense<0.000000e+00> : vector<8x128xf32>
    %505 = tpu.matmul %504, %369, %cst_91 {dimension_numbers = #tpu.dot_dimension_numbers<[1], [0], [0], [1], [0, 0, 1, 1], [], []>} : vector<8x64xbf16>, vector<64x128xbf16>, vector<8x128xf32> -> vector<8x128xf32>
    %506 = arith.addf %359, %505 : vector<8x128xf32>
    %cst_92 = arith.constant 5.000000e-01 : f32
    %507 = vector.broadcast %cst_92 : f32 to vector<8x128xf32>
    %508 = arith.mulf %507, %506 : vector<8x128xf32>
    %509 = math.tanh %508 : vector<8x128xf32>
    %cst_93 = arith.constant 5.000000e-01 : f32
    %510 = vector.broadcast %cst_93 : f32 to vector<8x128xf32>
    %511 = arith.mulf %510, %509 : vector<8x128xf32>
    %cst_94 = arith.constant 5.000000e-01 : f32
    %512 = vector.broadcast %cst_94 : f32 to vector<8x128xf32>
    %513 = arith.addf %511, %512 : vector<8x128xf32>
    %514 = math.tanh %506 : vector<8x128xf32>
    %515 = vector.extract_strided_slice %513 {offsets = [0, 0], sizes = [8, 32], strides = [1, 1]} : vector<8x128xf32> to vector<8x32xf32>
    %516 = vector.extract_strided_slice %513 {offsets = [0, 32], sizes = [8, 32], strides = [1, 1]} : vector<8x128xf32> to vector<8x32xf32>
    %517 = vector.extract_strided_slice %514 {offsets = [0, 64], sizes = [8, 32], strides = [1, 1]} : vector<8x128xf32> to vector<8x32xf32>
    %518 = vector.extract_strided_slice %513 {offsets = [0, 96], sizes = [8, 32], strides = [1, 1]} : vector<8x128xf32> to vector<8x32xf32>
    %519 = arith.mulf %516, %498 : vector<8x32xf32>
    %520 = arith.mulf %515, %517 : vector<8x32xf32>
    %521 = arith.addf %519, %520 : vector<8x32xf32>
    %522 = math.tanh %521 : vector<8x32xf32>
    %523 = arith.mulf %518, %522 : vector<8x32xf32>
    %c4_i32_95 = arith.constant 4 : i32
    %524 = vector.broadcast %c4_i32_95 : i32 to vector<8x1xi32>
    %525 = arith.cmpi sle, %0, %524 : vector<8x1xi32>
    %c4_i32_96 = arith.constant 4 : i32
    %526 = vector.broadcast %c4_i32_96 : i32 to vector<8x1xi32>
    %527 = arith.cmpi sgt, %1, %526 : vector<8x1xi32>
    %528 = arith.andi %525, %527 : vector<8x1xi1>
    %529 = vector.shape_cast %528 : vector<8x1xi1> to vector<8x1xi1>
    %530 = vector.broadcast %529 : vector<8x1xi1> to vector<8x32xi1>
    %531 = arith.select %530, %521, %498 : vector<8x32xi1>, vector<8x32xf32>
    %532 = tpu.concatenate %523, %523 in 1 : vector<8x32xf32>, vector<8x32xf32> -> vector<8x64xf32>
    %533 = arith.mulf %532, %11 : vector<8x64xf32>
    %534 = vector.shape_cast %528 : vector<8x1xi1> to vector<8x1xi1>
    %535 = vector.broadcast %534 : vector<8x1xi1> to vector<8x64xi1>
    %536 = arith.select %535, %533, %503 : vector<8x64xi1>, vector<8x64xf32>
    %537 = arith.truncf %536 : vector<8x64xf32> to vector<8x64xbf16>
    %cst_97 = arith.constant dense<0.000000e+00> : vector<8x128xf32>
    %538 = tpu.matmul %537, %369, %cst_97 {dimension_numbers = #tpu.dot_dimension_numbers<[1], [0], [0], [1], [0, 0, 1, 1], [], []>} : vector<8x64xbf16>, vector<64x128xbf16>, vector<8x128xf32> -> vector<8x128xf32>
    %539 = arith.addf %362, %538 : vector<8x128xf32>
    %cst_98 = arith.constant 5.000000e-01 : f32
    %540 = vector.broadcast %cst_98 : f32 to vector<8x128xf32>
    %541 = arith.mulf %540, %539 : vector<8x128xf32>
    %542 = math.tanh %541 : vector<8x128xf32>
    %cst_99 = arith.constant 5.000000e-01 : f32
    %543 = vector.broadcast %cst_99 : f32 to vector<8x128xf32>
    %544 = arith.mulf %543, %542 : vector<8x128xf32>
    %cst_100 = arith.constant 5.000000e-01 : f32
    %545 = vector.broadcast %cst_100 : f32 to vector<8x128xf32>
    %546 = arith.addf %544, %545 : vector<8x128xf32>
    %547 = math.tanh %539 : vector<8x128xf32>
    %548 = vector.extract_strided_slice %546 {offsets = [0, 0], sizes = [8, 32], strides = [1, 1]} : vector<8x128xf32> to vector<8x32xf32>
    %549 = vector.extract_strided_slice %546 {offsets = [0, 32], sizes = [8, 32], strides = [1, 1]} : vector<8x128xf32> to vector<8x32xf32>
    %550 = vector.extract_strided_slice %547 {offsets = [0, 64], sizes = [8, 32], strides = [1, 1]} : vector<8x128xf32> to vector<8x32xf32>
    %551 = vector.extract_strided_slice %546 {offsets = [0, 96], sizes = [8, 32], strides = [1, 1]} : vector<8x128xf32> to vector<8x32xf32>
    %552 = arith.mulf %549, %531 : vector<8x32xf32>
    %553 = arith.mulf %548, %550 : vector<8x32xf32>
    %554 = arith.addf %552, %553 : vector<8x32xf32>
    %555 = math.tanh %554 : vector<8x32xf32>
    %556 = arith.mulf %551, %555 : vector<8x32xf32>
    %c5_i32_101 = arith.constant 5 : i32
    %557 = vector.broadcast %c5_i32_101 : i32 to vector<8x1xi32>
    %558 = arith.cmpi sle, %0, %557 : vector<8x1xi32>
    %c5_i32_102 = arith.constant 5 : i32
    %559 = vector.broadcast %c5_i32_102 : i32 to vector<8x1xi32>
    %560 = arith.cmpi sgt, %1, %559 : vector<8x1xi32>
    %561 = arith.andi %558, %560 : vector<8x1xi1>
    %562 = vector.shape_cast %561 : vector<8x1xi1> to vector<8x1xi1>
    %563 = vector.broadcast %562 : vector<8x1xi1> to vector<8x32xi1>
    %564 = arith.select %563, %554, %531 : vector<8x32xi1>, vector<8x32xf32>
    %565 = tpu.concatenate %556, %556 in 1 : vector<8x32xf32>, vector<8x32xf32> -> vector<8x64xf32>
    %566 = arith.mulf %565, %11 : vector<8x64xf32>
    %567 = vector.shape_cast %561 : vector<8x1xi1> to vector<8x1xi1>
    %568 = vector.broadcast %567 : vector<8x1xi1> to vector<8x64xi1>
    %569 = arith.select %568, %566, %536 : vector<8x64xi1>, vector<8x64xf32>
    %570 = arith.truncf %569 : vector<8x64xf32> to vector<8x64xbf16>
    %cst_103 = arith.constant dense<0.000000e+00> : vector<8x128xf32>
    %571 = tpu.matmul %570, %369, %cst_103 {dimension_numbers = #tpu.dot_dimension_numbers<[1], [0], [0], [1], [0, 0, 1, 1], [], []>} : vector<8x64xbf16>, vector<64x128xbf16>, vector<8x128xf32> -> vector<8x128xf32>
    %572 = arith.addf %365, %571 : vector<8x128xf32>
    %cst_104 = arith.constant 5.000000e-01 : f32
    %573 = vector.broadcast %cst_104 : f32 to vector<8x128xf32>
    %574 = arith.mulf %573, %572 : vector<8x128xf32>
    %575 = math.tanh %574 : vector<8x128xf32>
    %cst_105 = arith.constant 5.000000e-01 : f32
    %576 = vector.broadcast %cst_105 : f32 to vector<8x128xf32>
    %577 = arith.mulf %576, %575 : vector<8x128xf32>
    %cst_106 = arith.constant 5.000000e-01 : f32
    %578 = vector.broadcast %cst_106 : f32 to vector<8x128xf32>
    %579 = arith.addf %577, %578 : vector<8x128xf32>
    %580 = math.tanh %572 : vector<8x128xf32>
    %581 = vector.extract_strided_slice %579 {offsets = [0, 0], sizes = [8, 32], strides = [1, 1]} : vector<8x128xf32> to vector<8x32xf32>
    %582 = vector.extract_strided_slice %579 {offsets = [0, 32], sizes = [8, 32], strides = [1, 1]} : vector<8x128xf32> to vector<8x32xf32>
    %583 = vector.extract_strided_slice %580 {offsets = [0, 64], sizes = [8, 32], strides = [1, 1]} : vector<8x128xf32> to vector<8x32xf32>
    %584 = vector.extract_strided_slice %579 {offsets = [0, 96], sizes = [8, 32], strides = [1, 1]} : vector<8x128xf32> to vector<8x32xf32>
    %585 = arith.mulf %582, %564 : vector<8x32xf32>
    %586 = arith.mulf %581, %583 : vector<8x32xf32>
    %587 = arith.addf %585, %586 : vector<8x32xf32>
    %588 = math.tanh %587 : vector<8x32xf32>
    %589 = arith.mulf %584, %588 : vector<8x32xf32>
    %c6_i32_107 = arith.constant 6 : i32
    %590 = vector.broadcast %c6_i32_107 : i32 to vector<8x1xi32>
    %591 = arith.cmpi sle, %0, %590 : vector<8x1xi32>
    %c6_i32_108 = arith.constant 6 : i32
    %592 = vector.broadcast %c6_i32_108 : i32 to vector<8x1xi32>
    %593 = arith.cmpi sgt, %1, %592 : vector<8x1xi32>
    %594 = arith.andi %591, %593 : vector<8x1xi1>
    %595 = vector.shape_cast %594 : vector<8x1xi1> to vector<8x1xi1>
    %596 = vector.broadcast %595 : vector<8x1xi1> to vector<8x32xi1>
    %597 = arith.select %596, %587, %564 : vector<8x32xi1>, vector<8x32xf32>
    %598 = tpu.concatenate %589, %589 in 1 : vector<8x32xf32>, vector<8x32xf32> -> vector<8x64xf32>
    %599 = arith.mulf %598, %11 : vector<8x64xf32>
    %600 = vector.shape_cast %594 : vector<8x1xi1> to vector<8x1xi1>
    %601 = vector.broadcast %600 : vector<8x1xi1> to vector<8x64xi1>
    %602 = arith.select %601, %599, %569 : vector<8x64xi1>, vector<8x64xf32>
    %603 = arith.truncf %602 : vector<8x64xf32> to vector<8x64xbf16>
    %cst_109 = arith.constant dense<0.000000e+00> : vector<8x128xf32>
    %604 = tpu.matmul %603, %369, %cst_109 {dimension_numbers = #tpu.dot_dimension_numbers<[1], [0], [0], [1], [0, 0, 1, 1], [], []>} : vector<8x64xbf16>, vector<64x128xbf16>, vector<8x128xf32> -> vector<8x128xf32>
    %605 = arith.addf %368, %604 : vector<8x128xf32>
    %cst_110 = arith.constant 5.000000e-01 : f32
    %606 = vector.broadcast %cst_110 : f32 to vector<8x128xf32>
    %607 = arith.mulf %606, %605 : vector<8x128xf32>
    %608 = math.tanh %607 : vector<8x128xf32>
    %cst_111 = arith.constant 5.000000e-01 : f32
    %609 = vector.broadcast %cst_111 : f32 to vector<8x128xf32>
    %610 = arith.mulf %609, %608 : vector<8x128xf32>
    %cst_112 = arith.constant 5.000000e-01 : f32
    %611 = vector.broadcast %cst_112 : f32 to vector<8x128xf32>
    %612 = arith.addf %610, %611 : vector<8x128xf32>
    %613 = math.tanh %605 : vector<8x128xf32>
    %614 = vector.extract_strided_slice %612 {offsets = [0, 0], sizes = [8, 32], strides = [1, 1]} : vector<8x128xf32> to vector<8x32xf32>
    %615 = vector.extract_strided_slice %612 {offsets = [0, 32], sizes = [8, 32], strides = [1, 1]} : vector<8x128xf32> to vector<8x32xf32>
    %616 = vector.extract_strided_slice %613 {offsets = [0, 64], sizes = [8, 32], strides = [1, 1]} : vector<8x128xf32> to vector<8x32xf32>
    %617 = vector.extract_strided_slice %612 {offsets = [0, 96], sizes = [8, 32], strides = [1, 1]} : vector<8x128xf32> to vector<8x32xf32>
    %618 = arith.mulf %615, %597 : vector<8x32xf32>
    %619 = arith.mulf %614, %616 : vector<8x32xf32>
    %620 = arith.addf %618, %619 : vector<8x32xf32>
    %621 = math.tanh %620 : vector<8x32xf32>
    %622 = arith.mulf %617, %621 : vector<8x32xf32>
    %c7_i32_113 = arith.constant 7 : i32
    %623 = vector.broadcast %c7_i32_113 : i32 to vector<8x1xi32>
    %624 = arith.cmpi sle, %0, %623 : vector<8x1xi32>
    %c7_i32_114 = arith.constant 7 : i32
    %625 = vector.broadcast %c7_i32_114 : i32 to vector<8x1xi32>
    %626 = arith.cmpi sgt, %1, %625 : vector<8x1xi32>
    %627 = arith.andi %624, %626 : vector<8x1xi1>
    %628 = tpu.concatenate %622, %622 in 1 : vector<8x32xf32>, vector<8x32xf32> -> vector<8x64xf32>
    %629 = arith.mulf %628, %11 : vector<8x64xf32>
    %630 = vector.shape_cast %627 : vector<8x1xi1> to vector<8x1xi1>
    %631 = vector.broadcast %630 : vector<8x1xi1> to vector<8x64xi1>
    %632 = arith.select %631, %629, %602 : vector<8x64xi1>, vector<8x64xf32>
    %633 = vector.extract_strided_slice %632 {offsets = [0, 0], sizes = [8, 32], strides = [1, 1]} : vector<8x64xf32> to vector<8x32xf32>
    %634 = vector.extract_strided_slice %632 {offsets = [0, 32], sizes = [8, 32], strides = [1, 1]} : vector<8x64xf32> to vector<8x32xf32>
    %635 = arith.addf %633, %634 : vector<8x32xf32>
    %636 = vector.extract_strided_slice %635 {offsets = [0, 0], sizes = [2, 32], strides = [1, 1]} : vector<8x32xf32> to vector<2x32xf32>
    %637 = vector.extract_strided_slice %635 {offsets = [4, 0], sizes = [2, 32], strides = [1, 1]} : vector<8x32xf32> to vector<2x32xf32>
    %638 = vector.extract_strided_slice %635 {offsets = [2, 0], sizes = [2, 32], strides = [1, 1]} : vector<8x32xf32> to vector<2x32xf32>
    %639 = vector.extract_strided_slice %635 {offsets = [6, 0], sizes = [2, 32], strides = [1, 1]} : vector<8x32xf32> to vector<2x32xf32>
    %640 = tpu.concatenate %636, %637, %638, %639 in 1 : vector<2x32xf32>, vector<2x32xf32>, vector<2x32xf32>, vector<2x32xf32> -> vector<2x128xf32>
    %c0_115 = arith.constant 0 : index
    %c0_116 = arith.constant 0 : index
    %641 = vector.load %arg7[%c0_115, %c0_116] : memref<128x1xf32, #tpu.memory_space<vmem>>, vector<128x1xf32>
    %cst_117 = arith.constant dense<0.000000e+00> : vector<2x1xf32>
    %642 = tpu.matmul %640, %641, %cst_117 {dimension_numbers = #tpu.dot_dimension_numbers<[1], [0], [0], [1], [0, 0, 1, 1], [], []>} : vector<2x128xf32>, vector<128x1xf32>, vector<2x1xf32> -> vector<2x1xf32>
    %c0_118 = arith.constant 0 : index
    %c0_119 = arith.constant 0 : index
    %643 = vector.load %arg8[%c0_118, %c0_119] : memref<1x1xf32, #tpu.memory_space<vmem>>, vector<1x1xf32>
    %644 = vector.broadcast %643 : vector<1x1xf32> to vector<2x1xf32>
    %645 = arith.addf %642, %644 : vector<2x1xf32>
    %cst_120 = arith.constant 5.000000e-01 : f32
    %646 = vector.broadcast %cst_120 : f32 to vector<2x1xf32>
    %647 = arith.mulf %646, %645 : vector<2x1xf32>
    %648 = math.tanh %647 : vector<2x1xf32>
    %cst_121 = arith.constant 5.000000e-01 : f32
    %649 = vector.broadcast %cst_121 : f32 to vector<2x1xf32>
    %650 = arith.mulf %649, %648 : vector<2x1xf32>
    %cst_122 = arith.constant 5.000000e-01 : f32
    %651 = vector.broadcast %cst_122 : f32 to vector<2x1xf32>
    %652 = arith.addf %650, %651 : vector<2x1xf32>
    %c0_123 = arith.constant 0 : index
    %c0_124 = arith.constant 0 : index
    %653 = vector.load %arg9[%c0_123, %c0_124] : memref<2x1xf32, #tpu.memory_space<vmem>>, vector<2x1xf32>
    tpu.vector_store %arg9[%c0_123, %c0_124], %652 {strides = array<i32>} : memref<2x1xf32, #tpu.memory_space<vmem>>, vector<2x1xf32>,
    return
  }
}

</mosaic_0001>

<bundles_post_ra>
// kernel: supply_classifier_forward.1
= control target key start
LH: loop header
LB: loop body
LE: loop exit
PB: predicated region body
PF: predicated region fallthrough
CT: control target
= control target key end

     0   :  { %v2341_v0 = vmov 0.0   ;;  %vm2342_vm0 = vmmov 0   ;;  %v2343_v2 = vmov 0   ;;  %s2344_s18 = smov 64   ;;  %s2345_s19 = smov 32   ;;  %v37_v28 = vlaneseq  ;;  %s3070_s3 = inlined_call_operand.vmem [shape: bf16[64,128], index: 3, kind: input, shape index: {}]   ;;  %s3071_s0 = inlined_call_operand.vmem [shape: f32[64,128], index: 0, kind: input, shape index: {}]   ;;  %s3072_s1 = inlined_call_operand.vmem [shape: s32[8,1], index: 1, kind: input, shape index: {}]   ;;  %s3073_s2 = inlined_call_operand.vmem [shape: s32[8,1], index: 2, kind: input, shape index: {}]   ;;  %s3074_s4 = inlined_call_operand.vmem [shape: bf16[64,256], index: 4, kind: input, shape index: {}]   ;;  %s3075_s6 = inlined_call_operand.vmem [shape: bf16[64,128], index: 6, kind: input, shape index: {}]   ;;  %s3076_s5 = inlined_call_operand.vmem [shape: f32[1,256], index: 5, kind: input, shape index: {}]   ;;  %s3077_s7 = inlined_call_operand.vmem [shape: f32[128,1], index: 7, kind: input, shape index: {}]   ;;  %s3078_s8 = inlined_call_operand.<no memory space> [shape: f32[1,1], index: 8, kind: input, shape index: {}]   ;;  %s3079_s9 = inlined_call_operand.vmem [shape: f32[2,1], index: 9, kind: output, shape index: {}]  }
   0x1   :  { %1922 = vmatprep.subr.bf16.mxu0 %v2341_v0  ;;  %v2403_v1 = vld [vmem:[%s3070_s3] sm:$0xff]   ;;  %1930 = vmatprep.mubr.msk.bf16.mxu0 %vm2342_vm0, %v2341_v0  ;;  %v2413_v3 = vld [vmem:[%s3070_s3 + $0x8] sm:$0xff]   ;;  %v2425_v4 = vld [vmem:[%s3070_s3 + $0x10] sm:$0xff]   ;;  %vm2346_vm7 = vmmov 1   ;;  %vm170_vm9 = vcmask 261120   ;;  %vm87_vm11 = vcmask 523264  }
   0x2   :  { %2181 = vset.pattern.permute.xlu1 %v2343_v2  ;;  %1934 = vmatprep.subr.bf16.mxu1 %v2341_v0  ;;  %v2434_v5 = vld [vmem:[%s3070_s3 + $0x18] sm:$0xff]   ;;  %v47_v6 = vld [vmem:[%s3071_s0] sm:$0xff]  ;;  %v2482_v29 = vshrl.u32 %v37_v28, 7  ;;  %v40_v30 = vand.u32 127, %v37_v28  ;;  %v48_v39 = vld [vmem:[%s3071_s0 + $0x8] sm:$0xff]  ;;  %s2348_s23 = smov 96  }
   0x3   :  { %1923 = vmatpush3.bf16.msra.mxu0 %v2403_v1  ;;  %1935 = vmatpush3.bf16.msra.mxu1 %v2403_v1  ;;  %v2465_v22 = vld [vmem:[%s3072_s1] sm:$0xff] }
   0x4   :  { %1924 = vmatprep.subr.bf16.mxu0 %v2341_v0  ;;  %1936 = vmatprep.subr.bf16.mxu1 %v2341_v0  ;;  %v2470_v23 = vld [vmem:[%s3073_s2] sm:$0xff]  ;;  %vm154_vm1 = vcmp.le.s32.totalorder %v2465_v22, 0  ;;  %vm41_vm4 = vcmp.lt.s32.totalorder %v2482_v29, 4  ;;  %vm42_vm5 = vcmp.lt.s32.totalorder %v40_v30, 32  ;;  %vm242_vm12 = vcmp.le.s32.totalorder %v2465_v22, 1 }
   0x5   :  { %1942 = vmatprep.mubr.msk.bf16.mxu1 %vm2342_vm0, %v2341_v0  ;;  %2182 = vset.pattern.permute.xlu0 %v2343_v2  ;;  %vm155_vm2 = vcmp.gt.s32.totalorder %v2470_v23, 0  ;;  %vm43_vm6 = vmxor %vm41_vm4, %vm42_vm5  ;;  %vm243_vm13 = vcmp.gt.s32.totalorder %v2470_v23, 1  ;;  %vm416_vm5 = vcmp.le.s32.totalorder %v2465_v22, 3 }
   0x6   :  { %vm156_vm3 = vmand %vm154_vm1, %vm155_vm2  ;;  %vm329_vm1 = vcmp.le.s32.totalorder %v2465_v22, 2  ;;  %vm330_vm2 = vcmp.gt.s32.totalorder %v2470_v23, 2 }
   0x7   :  { %1925 = vmatpush3.bf16.msra.mxu0 %v2413_v3  ;;  %1937 = vmatpush3.bf16.msra.mxu1 %v2413_v3  ;;  %v157_v25 = vsel %vm156_vm3, 1, %v2343_v2  ;;  %vm44_vm8 = vmxor %vm43_vm6, %vm2346_vm7  ;;  %vm417_vm6 = vcmp.gt.s32.totalorder %v2470_v23, 3 }
   0x8   :  { %1926 = vmatprep.subr.bf16.mxu0 %v2341_v0  ;;  %1938 = vmatprep.subr.bf16.mxu1 %v2341_v0  ;;  %v2488_v32 = vsel %vm44_vm8, 1.0, %v2341_v0  ;;  %vm244_vm14 = vmand %vm242_vm12, %vm243_vm13  ;;  %vm503_vm12 = vcmp.le.s32.totalorder %v2465_v22, 4  ;;  %vm504_vm13 = vcmp.gt.s32.totalorder %v2470_v23, 4 }
   0x9   :  { %v245_v52 = vsel %vm244_vm14, 1, %v2343_v2  ;;  %vm331_vm3 = vmand %vm329_vm1, %vm330_vm2  ;;  %vm590_vm2 = vcmp.le.s32.totalorder %v2465_v22, 5 }
   0xa   :  { %vm418_vm7 = vmand %vm416_vm5, %vm417_vm6 }
   0xb   :  { %1927 = vmatpush3.bf16.msra.mxu0 %v2425_v4  ;;  %1939 = vmatpush3.bf16.msra.mxu1 %v2425_v4  ;;  %vm505_vm14 = vmand %vm503_vm12, %vm504_vm13  ;;  %vm678_vm12 = vcmp.gt.s32.totalorder %v2470_v23, 6 }
   0xc   :  { %1928 = vmatprep.subr.bf16.mxu0 %v2341_v0  ;;  %1940 = vmatprep.subr.bf16.mxu1 %v2341_v0 }
   0xf   :  { %1929 = vmatpush3.bf16.msra.mxu0 %v2434_v5  ;;  %1941 = vmatpush3.bf16.msra.mxu1 %v2434_v5 }
  0x10   :  { %1946 = vmatprep.subr.bf16.mxu0 %v2341_v0  ;;  %1958 = vmatprep.subr.bf16.mxu1 %v2341_v0 }
  0x12   :  { %1931 = vmatmul.mubr.bf16.vlgmr.msra.gmra.mrb[0].mxu0 %v2343_v2 }
  0x13   :  { %1947 = vmatpush3.bf16.msra.mxu0 %v2403_v1  ;;  %1954 = vmatprep.mubr.msk.bf16.mxu0 %vm2342_vm0, %v2341_v0 }
  0x14   :  { %1948 = vmatprep.subr.bf16.mxu0 %v2341_v0 }
  0x17   :  { %1949 = vmatpush3.bf16.msra.mxu0 %v2413_v3 }
  0x18   :  { %1950 = vmatprep.subr.bf16.mxu0 %v2341_v0 }
  0x1b   :  { %1951 = vmatpush3.bf16.msra.mxu0 %v2425_v4 }
  0x1c   :  { %1952 = vmatprep.subr.bf16.mxu0 %v2341_v0 }
  0x1f   :  { %1953 = vmatpush3.bf16.msra.mxu0 %v2434_v5 }
  0x20   :  { %1970 = vmatprep.subr.bf16.mxu0 %v2341_v0 }
  0xe5   :  { %v125_v7 = vpop.f32.mrb[0].mxu0 }
  0xe6   :  { %v131_v8 = vadd.f32 %v125_v7, %v47_v6  ;;  %v1932_v9 = vpop.f32.mrb[1].mxu0 }
  0xe7   :  { %v128_v10 = vpop.f32.mrb[2].mxu0  ;;  %v49_v9 = vld [vmem:[%s3071_s0 + $0x10] sm:$0xff] }
  0xe8   :  { %2243 = vtanh.f32 %v131_v8  ;;  %v1933_v11 = vpop.f32.mrb[3].mxu0  ;;  %v132_v13 = vmul.f32 0.5, %v131_v8 }
  0xea   :  { %2245 = vtanh.f32 %v132_v13 }
  0xf2   :  { %v2244_v12 = vpop.eup %2243 }
  0xf3   :  { %139 = vrot.lane.b32.xlu0 %v2244_v12, %s2344_s18 }
  0xf4   :  { %v2246_v14 = vpop.eup %2245 }
  0xf5   :  { %v134_v15 = vmul.f32 0.5, %v2246_v14 }
  0xf7   :  { %v135_v16 = vadd.f32 0.5, %v134_v15 }
  0xf9   :  { %v137_v19 = vmul.f32 0.0, %v135_v16 }
 0x165   :  { %v140_v17 = vpop.permute.xlu0 %139 }
 0x166   :  { %v142_v18 = vmul.f32 %v140_v17, %v135_v16 }
 0x168   :  { %144 = vrot.lane.b32.xlu0 %v142_v18, %s2345_s19 }
 0x1da   :  { %v145_v20 = vpop.permute.xlu0 %144 }
 0x1db   :  { %v2459_v21 = vadd.f32 %v145_v20, %v137_v19 }
 0x1dd   :  { %2247 = vtanh.f32 %v2459_v21 }
 0x1e7   :  { %v2248_v24 = vpop.eup %2247 }
 0x1e8   :  { %150 = vrot.lane.b32.xlu1 %v2248_v24, %s2344_s18  ;;  %v332_v24 = vsel %vm331_vm3, 1, %v2343_v2  ;;  %vm591_vm3 = vcmp.gt.s32.totalorder %v2470_v23, 5 }
 0x1e9   :  { %vm592_vm5 = vmand %vm590_vm2, %vm591_vm3  ;;  %vm764_vm2 = vcmp.le.s32.totalorder %v2465_v22, 7  ;;  %vm765_vm3 = vcmp.gt.s32.totalorder %v2470_v23, 7 }
 0x1ec   :  { %159 = vperm.xlu1 %2181, %v157_v25  }
 0x25a   :  { %v151_v26 = vpop.permute.xlu1 %150 }
 0x25b   :  { %v2476_v27 = vmul.f32 %v151_v26, %v135_v16 }
 0x25d   :  { %167 = vrot.lane.b32.xlu1 %v2476_v27, %s2344_s18  ;;  %164 = vrot.lane.b32.xlu0 %v2476_v27, %s2345_s19 }
 0x26b   :  { %v2485_v31 = vpop.permute.xlu1 %159 }
 0x26c   :  { %vm161_vm10 = vcmp.eq.s32.totalorder %v2485_v31, 1 }
 0x26d   :  { %v162_v53 = vsel %vm161_vm10, %v2459_v21, 0.0 }
 0x2cf   :  { %v165_v33 = vpop.permute.xlu0 %164  ;;  %v168_v34 = vpop.permute.xlu1 %167 }
 0x2d0   :  { %v171_v35 = vsel %vm170_vm9, %v165_v33, %v168_v34 }
 0x2d1   :  { %v172_v36 = vmul.f32 %v2488_v32, %v171_v35 }
 0x2d3   :  { %v173_v37 = vsel %vm161_vm10, %v172_v36, 0.0 }
 0x2d4   :  { %v175_v38 = vpack.c.bf16 %v173_v37, %v173_v37 }
 0x2d6   :  { %1943 = vmatmul.mubr.msk.bf16.vlgmr.msra.gmra.mrb[0].mxu1 %vm87_vm11, %v175_v38 }
 0x2d7   :  { %1959 = vmatpush3.bf16.msra.mxu1 %v2403_v1  ;;  %1966 = vmatprep.mubr.msk.bf16.mxu1 %vm2342_vm0, %v2341_v0 }
 0x2d8   :  { %1960 = vmatprep.subr.bf16.mxu1 %v2341_v0 }
 0x2db   :  { %1961 = vmatpush3.bf16.msra.mxu1 %v2413_v3 }
 0x2dc   :  { %1962 = vmatprep.subr.bf16.mxu1 %v2341_v0 }
 0x2df   :  { %1963 = vmatpush3.bf16.msra.mxu1 %v2425_v4 }
 0x2e0   :  { %1964 = vmatprep.subr.bf16.mxu1 %v2341_v0 }
 0x2e3   :  { %1965 = vmatpush3.bf16.msra.mxu1 %v2434_v5 }
 0x2e4   :  { %1982 = vmatprep.subr.bf16.mxu1 %v2341_v0 }
 0x3a9   :  { %v213_v40 = vpop.f32.mrb[0].mxu1 }
 0x3aa   :  { %v219_v41 = vadd.f32 %v213_v40, %v48_v39  ;;  %v1944_v42 = vpop.f32.mrb[1].mxu1 }
 0x3ab   :  { %v216_v43 = vpop.f32.mrb[2].mxu1 }
 0x3ac   :  { %2249 = vtanh.f32 %v219_v41  ;;  %v1945_v44 = vpop.f32.mrb[3].mxu1  ;;  %v220_v46 = vmul.f32 0.5, %v219_v41  ;;  %v50_v43 = vld [vmem:[%s3071_s0 + $0x18] sm:$0xff] }
 0x3ae   :  { %2251 = vtanh.f32 %v220_v46 }
 0x3b6   :  { %v2250_v45 = vpop.eup %2249 }
 0x3b7   :  { %227 = vrot.lane.b32.xlu0 %v2250_v45, %s2344_s18 }
 0x3b8   :  { %v2252_v47 = vpop.eup %2251 }
 0x3b9   :  { %v222_v48 = vmul.f32 0.5, %v2252_v47 }
 0x3bb   :  { %v223_v49 = vadd.f32 0.5, %v222_v48 }
 0x3bd   :  { %v225_v54 = vmul.f32 %v223_v49, %v162_v53 }
 0x429   :  { %v228_v50 = vpop.permute.xlu0 %227 }
 0x42a   :  { %v230_v51 = vmul.f32 %v228_v50, %v223_v49 }
 0x42c   :  { %232 = vrot.lane.b32.xlu1 %v230_v51, %s2345_s19 }
 0x430   :  { %247 = vperm.xlu1 %2181, %v245_v52  }
 0x49e   :  { %v233_v55 = vpop.permute.xlu1 %232 }
 0x49f   :  { %v235_v56 = vadd.f32 %v233_v55, %v225_v54 }
 0x4a1   :  { %2253 = vtanh.f32 %v235_v56 }
 0x4ab   :  { %v2254_v57 = vpop.eup %2253 }
 0x4ac   :  { %238 = vrot.lane.b32.xlu0 %v2254_v57, %s2344_s18 }
 0x4af   :  { %v2524_v60 = vpop.permute.xlu1 %247 }
 0x4b0   :  { %vm249_vm15 = vcmp.eq.s32.totalorder %v2524_v60, 1 }
 0x4b1   :  { %v250_v25 = vsel %vm249_vm15, %v235_v56, %v162_v53  ;;  %v419_v56 = vsel %vm418_vm7, 1, %v2343_v2  ;;  %vm677_vm7 = vcmp.le.s32.totalorder %v2465_v22, 6 }
 0x4b2   :  { %vm679_vm13 = vmand %vm677_vm7, %vm678_vm12  ;;  %vm857_vm12 = vcmask 1043456  }
 0x51e   :  { %v239_v58 = vpop.permute.xlu0 %238 }
 0x51f   :  { %v2518_v59 = vmul.f32 %v239_v58, %v223_v49 }
 0x521   :  { %255 = vrot.lane.b32.xlu1 %v2518_v59, %s2344_s18  ;;  %252 = vrot.lane.b32.xlu0 %v2518_v59, %s2345_s19 }
 0x593   :  { %v256_v61 = vpop.permute.xlu1 %255  ;;  %v253_v62 = vpop.permute.xlu0 %252 }
 0x594   :  { %v258_v63 = vsel %vm170_vm9, %v253_v62, %v256_v61 }
 0x595   :  { %v259_v6 = vmul.f32 %v2488_v32, %v258_v63 }
 0x597   :  { %v260_v7 = vsel %vm249_vm15, %v259_v6, %v173_v37 }
 0x598   :  { %v262_v8 = vpack.c.bf16 %v260_v7, %v260_v7 }
 0x59a   :  { %1955 = vmatmul.mubr.msk.bf16.vlgmr.msra.gmra.mrb[4].mxu0 %vm87_vm11, %v262_v8 }
 0x59b   :  { %1971 = vmatpush3.bf16.msra.mxu0 %v2403_v1  ;;  %1978 = vmatprep.mubr.msk.bf16.mxu0 %vm2342_vm0, %v2341_v0 }
 0x59c   :  { %1972 = vmatprep.subr.bf16.mxu0 %v2341_v0 }
 0x59f   :  { %1973 = vmatpush3.bf16.msra.mxu0 %v2413_v3 }
 0x5a0   :  { %1974 = vmatprep.subr.bf16.mxu0 %v2341_v0 }
 0x5a3   :  { %1975 = vmatpush3.bf16.msra.mxu0 %v2425_v4 }
 0x5a4   :  { %1976 = vmatprep.subr.bf16.mxu0 %v2341_v0 }
 0x5a7   :  { %1977 = vmatpush3.bf16.msra.mxu0 %v2434_v5 }
 0x5a8   :  { %1994 = vmatprep.subr.bf16.mxu0 %v2341_v0 }
 0x66d   :  { %v300_v10 = vpop.f32.mrb[4].mxu0 }
 0x66e   :  { %v306_v11 = vadd.f32 %v300_v10, %v49_v9  ;;  %v1956_v12 = vpop.f32.mrb[5].mxu0 }
 0x66f   :  { %v303_v13 = vpop.f32.mrb[6].mxu0 }
 0x670   :  { %2255 = vtanh.f32 %v306_v11  ;;  %v1957_v14 = vpop.f32.mrb[7].mxu0  ;;  %v307_v16 = vmul.f32 0.5, %v306_v11 }
 0x672   :  { %2257 = vtanh.f32 %v307_v16 }
 0x67a   :  { %v2256_v15 = vpop.eup %2255 }
 0x67b   :  { %314 = vrot.lane.b32.xlu0 %v2256_v15, %s2344_s18  ;;  %v51_v15 = vld [vmem:[%s3071_s0 + $0x20] sm:$0xff] }
 0x67c   :  { %v2258_v17 = vpop.eup %2257 }
 0x67d   :  { %v309_v18 = vmul.f32 0.5, %v2258_v17 }
 0x67f   :  { %v310_v19 = vadd.f32 0.5, %v309_v18 }
 0x681   :  { %v312_v26 = vmul.f32 %v310_v19, %v250_v25 }
 0x6ed   :  { %v315_v20 = vpop.permute.xlu0 %314 }
 0x6ee   :  { %v317_v21 = vmul.f32 %v315_v20, %v310_v19 }
 0x6f0   :  { %319 = vrot.lane.b32.xlu1 %v317_v21, %s2345_s19 }
 0x6f4   :  { %334 = vperm.xlu1 %2181, %v332_v24  }
 0x762   :  { %v320_v28 = vpop.permute.xlu1 %319 }
 0x763   :  { %v322_v30 = vadd.f32 %v320_v28, %v312_v26 }
 0x765   :  { %2259 = vtanh.f32 %v322_v30 }
 0x76f   :  { %v2260_v33 = vpop.eup %2259 }
 0x770   :  { %325 = vrot.lane.b32.xlu0 %v2260_v33, %s2344_s18 }
 0x773   :  { %v2559_v36 = vpop.permute.xlu1 %334 }
 0x774   :  { %vm336_vm4 = vcmp.eq.s32.totalorder %v2559_v36, 1 }
 0x775   :  { %v337_v57 = vsel %vm336_vm4, %v322_v30, %v250_v25 }
 0x7e2   :  { %v326_v34 = vpop.permute.xlu0 %325 }
 0x7e3   :  { %v2553_v35 = vmul.f32 %v326_v34, %v310_v19  ;;  %v506_v34 = vsel %vm505_vm14, 1, %v2343_v2 }
 0x7e5   :  { %342 = vrot.lane.b32.xlu1 %v2553_v35, %s2344_s18  ;;  %339 = vrot.lane.b32.xlu0 %v2553_v35, %s2345_s19 }
 0x857   :  { %v343_v37 = vpop.permute.xlu1 %342  ;;  %v340_v38 = vpop.permute.xlu0 %339 }
 0x858   :  { %v345_v39 = vsel %vm170_vm9, %v340_v38, %v343_v37 }
 0x859   :  { %v346_v40 = vmul.f32 %v2488_v32, %v345_v39 }
 0x85b   :  { %v347_v41 = vsel %vm336_vm4, %v346_v40, %v260_v7 }
 0x85c   :  { %v349_v42 = vpack.c.bf16 %v347_v41, %v347_v41 }
 0x85e   :  { %1967 = vmatmul.mubr.msk.bf16.vlgmr.msra.gmra.mrb[4].mxu1 %vm87_vm11, %v349_v42 }
 0x85f   :  { %1983 = vmatpush3.bf16.msra.mxu1 %v2403_v1  ;;  %1990 = vmatprep.mubr.msk.bf16.mxu1 %vm2342_vm0, %v2341_v0 }
 0x860   :  { %1984 = vmatprep.subr.bf16.mxu1 %v2341_v0 }
 0x863   :  { %1985 = vmatpush3.bf16.msra.mxu1 %v2413_v3 }
 0x864   :  { %1986 = vmatprep.subr.bf16.mxu1 %v2341_v0 }
 0x867   :  { %1987 = vmatpush3.bf16.msra.mxu1 %v2425_v4 }
 0x868   :  { %1988 = vmatprep.subr.bf16.mxu1 %v2341_v0 }
 0x86b   :  { %1989 = vmatpush3.bf16.msra.mxu1 %v2434_v5 }
 0x86c   :  { %2006 = vmatprep.subr.bf16.mxu1 %v2341_v0 }
 0x931   :  { %v387_v44 = vpop.f32.mrb[4].mxu1 }
 0x932   :  { %v393_v45 = vadd.f32 %v387_v44, %v50_v43  ;;  %v1968_v46 = vpop.f32.mrb[5].mxu1 }
 0x933   :  { %v390_v47 = vpop.f32.mrb[6].mxu1 }
 0x934   :  { %2261 = vtanh.f32 %v393_v45  ;;  %v1969_v48 = vpop.f32.mrb[7].mxu1  ;;  %v394_v50 = vmul.f32 0.5, %v393_v45 }
 0x936   :  { %2263 = vtanh.f32 %v394_v50 }
 0x93e   :  { %v2262_v49 = vpop.eup %2261 }
 0x93f   :  { %401 = vrot.lane.b32.xlu0 %v2262_v49, %s2344_s18 }
 0x940   :  { %v2264_v51 = vpop.eup %2263 }
 0x941   :  { %v396_v52 = vmul.f32 0.5, %v2264_v51 }
 0x943   :  { %v397_v53 = vadd.f32 0.5, %v396_v52 }
 0x945   :  { %v399_v58 = vmul.f32 %v397_v53, %v337_v57 }
 0x9b1   :  { %v402_v54 = vpop.permute.xlu0 %401 }
 0x9b2   :  { %v404_v55 = vmul.f32 %v402_v54, %v397_v53 }
 0x9b4   :  { %406 = vrot.lane.b32.xlu1 %v404_v55, %s2345_s19 }
 0x9b8   :  { %421 = vperm.xlu1 %2181, %v419_v56  }
 0xa26   :  { %v407_v61 = vpop.permute.xlu1 %406 }
 0xa27   :  { %v409_v62 = vadd.f32 %v407_v61, %v399_v58 }
 0xa29   :  { %2265 = vtanh.f32 %v409_v62 }
 0xa33   :  { %v2266_v63 = vpop.eup %2265 }
 0xa34   :  { %412 = vrot.lane.b32.xlu0 %v2266_v63, %s2344_s18 }
 0xa37   :  { %v2594_v8 = vpop.permute.xlu1 %421 }
 0xa38   :  { %vm423_vm8 = vcmp.eq.s32.totalorder %v2594_v8, 1 }
 0xa39   :  { %v424_v37 = vsel %vm423_vm8, %v409_v62, %v337_v57  ;;  %v593_v62 = vsel %vm592_vm5, 1, %v2343_v2  ;;  %vm766_vm5 = vmand %vm764_vm2, %vm765_vm3 }
 0xaa6   :  { %v413_v6 = vpop.permute.xlu0 %412 }
 0xaa7   :  { %v2588_v7 = vmul.f32 %v413_v6, %v397_v53 }
 0xaa9   :  { %429 = vrot.lane.b32.xlu1 %v2588_v7, %s2344_s18  ;;  %426 = vrot.lane.b32.xlu0 %v2588_v7, %s2345_s19 }
 0xb1b   :  { %v430_v9 = vpop.permute.xlu1 %429  ;;  %v427_v10 = vpop.permute.xlu0 %426 }
 0xb1c   :  { %v432_v11 = vsel %vm170_vm9, %v427_v10, %v430_v9 }
 0xb1d   :  { %v433_v12 = vmul.f32 %v2488_v32, %v432_v11 }
 0xb1f   :  { %v434_v13 = vsel %vm423_vm8, %v433_v12, %v347_v41 }
 0xb20   :  { %v436_v14 = vpack.c.bf16 %v434_v13, %v434_v13 }
 0xb22   :  { %1979 = vmatmul.mubr.msk.bf16.vlgmr.msra.gmra.mrb[8].mxu0 %vm87_vm11, %v436_v14 }
 0xb23   :  { %1995 = vmatpush3.bf16.msra.mxu0 %v2403_v1  ;;  %2002 = vmatprep.mubr.msk.bf16.mxu0 %vm2342_vm0, %v2341_v0 }
 0xb24   :  { %1996 = vmatprep.subr.bf16.mxu0 %v2341_v0 }
 0xb27   :  { %1997 = vmatpush3.bf16.msra.mxu0 %v2413_v3 }
 0xb28   :  { %1998 = vmatprep.subr.bf16.mxu0 %v2341_v0 }
 0xb2b   :  { %1999 = vmatpush3.bf16.msra.mxu0 %v2425_v4 }
 0xb2c   :  { %2000 = vmatprep.subr.bf16.mxu0 %v2341_v0 }
 0xb2f   :  { %2001 = vmatpush3.bf16.msra.mxu0 %v2434_v5 }
 0xbf5   :  { %v474_v16 = vpop.f32.mrb[8].mxu0 }
 0xbf6   :  { %v480_v17 = vadd.f32 %v474_v16, %v51_v15  ;;  %v1980_v18 = vpop.f32.mrb[9].mxu0 }
 0xbf7   :  { %v477_v19 = vpop.f32.mrb[10].mxu0 }
 0xbf8   :  { %2267 = vtanh.f32 %v480_v17  ;;  %v1981_v20 = vpop.f32.mrb[11].mxu0  ;;  %v481_v24 = vmul.f32 0.5, %v480_v17 }
 0xbfa   :  { %2269 = vtanh.f32 %v481_v24 }
 0xc02   :  { %v2268_v21 = vpop.eup %2267 }
 0xc03   :  { %488 = vrot.lane.b32.xlu0 %v2268_v21, %s2344_s18  ;;  %v53_v21 = vld [vmem:[%s3071_s0 + $0x30] sm:$0xff] }
 0xc04   :  { %v2270_v25 = vpop.eup %2269 }
 0xc05   :  { %v483_v26 = vmul.f32 0.5, %v2270_v25 }
 0xc07   :  { %v484_v28 = vadd.f32 0.5, %v483_v26 }
 0xc09   :  { %v486_v38 = vmul.f32 %v484_v28, %v424_v37 }
 0xc75   :  { %v489_v30 = vpop.permute.xlu0 %488 }
 0xc76   :  { %v491_v33 = vmul.f32 %v489_v30, %v484_v28 }
 0xc78   :  { %493 = vrot.lane.b32.xlu1 %v491_v33, %s2345_s19 }
 0xc7c   :  { %508 = vperm.xlu1 %2181, %v506_v34  }
 0xcea   :  { %v494_v39 = vpop.permute.xlu1 %493 }
 0xceb   :  { %v496_v40 = vadd.f32 %v494_v39, %v486_v38 }
 0xced   :  { %2271 = vtanh.f32 %v496_v40 }
 0xcf7   :  { %v2272_v41 = vpop.eup %2271 }
 0xcf8   :  { %499 = vrot.lane.b32.xlu0 %v2272_v41, %s2344_s18 }
 0xcfb   :  { %v2628_v44 = vpop.permute.xlu1 %508 }
 0xcfc   :  { %vm510_vm1 = vcmp.eq.s32.totalorder %v2628_v44, 1 }
 0xcfd   :  { %v511_v63 = vsel %vm510_vm1, %v496_v40, %v424_v37 }
 0xd6a   :  { %v500_v42 = vpop.permute.xlu0 %499 }
 0xd6b   :  { %v2622_v43 = vmul.f32 %v500_v42, %v484_v28  ;;  %v680_v42 = vsel %vm679_vm13, 1, %v2343_v2 }
 0xd6d   :  { %516 = vrot.lane.b32.xlu1 %v2622_v43, %s2344_s18  ;;  %513 = vrot.lane.b32.xlu0 %v2622_v43, %s2345_s19 }
 0xddf   :  { %v517_v45 = vpop.permute.xlu1 %516  ;;  %v514_v46 = vpop.permute.xlu0 %513 }
 0xde0   :  { %v519_v47 = vsel %vm170_vm9, %v514_v46, %v517_v45 }
 0xde1   :  { %v520_v48 = vmul.f32 %v2488_v32, %v519_v47 }
 0xde3   :  { %v521_v49 = vsel %vm510_vm1, %v520_v48, %v434_v13 }
 0xde4   :  { %v523_v50 = vpack.c.bf16 %v521_v49, %v521_v49 }
 0xde6   :  { %1991 = vmatmul.mubr.msk.bf16.vlgmr.msra.gmra.mrb[8].mxu1 %vm87_vm11, %v523_v50 }
 0xde7   :  { %2007 = vmatpush3.bf16.msra.mxu1 %v2403_v1  ;;  %2014 = vmatprep.mubr.msk.bf16.mxu1 %vm2342_vm0, %v2341_v0  ;;  %v52_v1 = vld [vmem:[%s3071_s0 + $0x28] sm:$0xff] }
 0xde8   :  { %2008 = vmatprep.subr.bf16.mxu1 %v2341_v0 }
 0xdeb   :  { %2009 = vmatpush3.bf16.msra.mxu1 %v2413_v3 }
 0xdec   :  { %2010 = vmatprep.subr.bf16.mxu1 %v2341_v0 }
 0xdef   :  { %2011 = vmatpush3.bf16.msra.mxu1 %v2425_v4 }
 0xdf0   :  { %2012 = vmatprep.subr.bf16.mxu1 %v2341_v0 }
 0xdf3   :  { %2013 = vmatpush3.bf16.msra.mxu1 %v2434_v5 }
 0xdf4   :  { %2018 = vmatprep.subr.bf16.mxu1 %v2341_v0 }
 0xeb9   :  { %v561_v51 = vpop.f32.mrb[8].mxu1 }
 0xeba   :  { %v567_v52 = vadd.f32 %v561_v51, %v52_v1  ;;  %v1992_v53 = vpop.f32.mrb[9].mxu1 }
 0xebb   :  { %v564_v54 = vpop.f32.mrb[10].mxu1 }
 0xebc   :  { %2273 = vtanh.f32 %v567_v52  ;;  %v1993_v3 = vpop.f32.mrb[11].mxu1  ;;  %v568_v4 = vmul.f32 0.5, %v567_v52 }
 0xebe   :  { %2275 = vtanh.f32 %v568_v4 }
 0xec6   :  { %v2274_v55 = vpop.eup %2273 }
 0xec7   :  { %575 = vrot.lane.b32.xlu0 %v2274_v55, %s2344_s18 }
 0xec8   :  { %v2276_v56 = vpop.eup %2275 }
 0xec9   :  { %v570_v57 = vmul.f32 0.5, %v2276_v56  ;;  %v54_v56 = vld [vmem:[%s3071_s0 + $0x38] sm:$0xff] }
 0xecb   :  { %v571_v5 = vadd.f32 0.5, %v570_v57 }
 0xecd   :  { %v573_v6 = vmul.f32 %v571_v5, %v511_v63 }
 0xf39   :  { %v576_v58 = vpop.permute.xlu0 %575 }
 0xf3a   :  { %v578_v61 = vmul.f32 %v576_v58, %v571_v5 }
 0xf3c   :  { %580 = vrot.lane.b32.xlu1 %v578_v61, %s2345_s19 }
 0xf40   :  { %595 = vperm.xlu1 %2181, %v593_v62  }
 0xfae   :  { %v581_v9 = vpop.permute.xlu1 %580 }
 0xfaf   :  { %v583_v10 = vadd.f32 %v581_v9, %v573_v6  ;;  %v2708_v9 = vsel %vm510_vm1, %v2622_v43, 0.0 }
 0xfb0   :  { %v808_v22 = vrot.slane %v2708_v9, 4 }
 0xfb1   :  { %2277 = vtanh.f32 %v583_v10 }
 0xfbb   :  { %v2278_v11 = vpop.eup %2277 }
 0xfbc   :  { %586 = vrot.lane.b32.xlu0 %v2278_v11, %s2344_s18 }
 0xfbf   :  { %v2663_v14 = vpop.permute.xlu1 %595 }
 0xfc0   :  { %vm597_vm6 = vcmp.eq.s32.totalorder %v2663_v14, 1 }
 0xfc1   :  { %v598_v45 = vsel %vm597_vm6, %v583_v10, %v511_v63  ;;  %v767_v10 = vsel %vm766_vm5, 1, %v2343_v2 }
0x102e   :  { %v587_v12 = vpop.permute.xlu0 %586 }
0x102f   :  { %v2657_v13 = vmul.f32 %v587_v12, %v571_v5 }
0x1031   :  { %603 = vrot.lane.b32.xlu1 %v2657_v13, %s2344_s18  ;;  %600 = vrot.lane.b32.xlu0 %v2657_v13, %s2345_s19 }
0x10a3   :  { %v604_v15 = vpop.permute.xlu1 %603  ;;  %v601_v16 = vpop.permute.xlu0 %600 }
0x10a4   :  { %v606_v17 = vsel %vm170_vm9, %v601_v16, %v604_v15 }
0x10a5   :  { %v607_v18 = vmul.f32 %v2488_v32, %v606_v17 }
0x10a7   :  { %v608_v19 = vsel %vm597_vm6, %v607_v18, %v521_v49 }
0x10a8   :  { %v610_v20 = vpack.c.bf16 %v608_v19, %v608_v19 }
0x10aa   :  { %2003 = vmatmul.mubr.msk.bf16.vlgmr.msra.gmra.mrb[12].mxu0 %vm87_vm11, %v610_v20 }
0x10ab   :  { %962 = vmatprep.mubr.bf16.mxu0 %v2343_v2 }
0x117d   :  { %v648_v24 = vpop.f32.mrb[12].mxu0 }
0x117e   :  { %v654_v25 = vadd.f32 %v648_v24, %v53_v21  ;;  %v2004_v26 = vpop.f32.mrb[13].mxu0 }
0x117f   :  { %v651_v28 = vpop.f32.mrb[14].mxu0  ;;  %v435_v26 = vsel %vm423_vm8, %v2588_v7, 0.0  ;;  %v2229_v7 = vld [vmem:[%s3074_s4 + $0x4] ss:$8 sps:$4 sm:$0xff]  }
0x1180   :  { %2279 = vtanh.f32 %v654_v25  ;;  %v2005_v30 = vpop.f32.mrb[15].mxu0  ;;  %v655_v34 = vmul.f32 0.5, %v654_v25  ;;  %v261_v28 = vsel %vm249_vm15, %v2518_v59, 0.0  ;;  %v2232_v59 = vld [vmem:[%s3074_s4 + $0x14] ss:$8 sps:$4 sm:$0xff]   ;;  %930 = vmatprep.subr.bf16.mxu0 %v2229_v7 }
0x1181   :  { %v2183_v30 = vpack.i.bf16 %v435_v26, %v261_v28 }
0x1182   :  { %2281 = vtanh.f32 %v655_v34  ;;  %v2227_v34 = vld [vmem:[%s3074_s4] ss:$8 sps:$4 sm:$0xff]  }
0x1183   :  { %931 = vmatpush1.bf16.msra.mxu0 %v2227_v34 }
0x1184   :  { %932 = vmatprep.subr.bf16.mxu0 %v2232_v59 }
0x118a   :  { %v2280_v33 = vpop.eup %2279 }
0x118b   :  { %662 = vrot.lane.b32.xlu0 %v2280_v33, %s2344_s18  ;;  %v348_v33 = vsel %vm336_vm4, %v2553_v35, 0.0  ;;  %v2230_v35 = vld [vmem:[%s3074_s4 + $0x10] ss:$8 sps:$4 sm:$0xff]  }
0x118c   :  { %v2282_v37 = vpop.eup %2281  ;;  %933 = vmatpush1.bf16.msra.mxu0 %v2230_v35 }
0x118d   :  { %v657_v38 = vmul.f32 0.5, %v2282_v37  ;;  %v174_v37 = vsel %vm161_vm10, %v2476_v27, 0.0  ;;  %v2233_v27 = vld [vmem:[%s3074_s4 + $0x20] ss:$8 sps:$4 sm:$0xff]  }
0x118f   :  { %v658_v39 = vadd.f32 0.5, %v657_v38  ;;  %v2193_v38 = vpack.i.bf16 %v348_v33, %v174_v37 }
0x1191   :  { %v660_v46 = vmul.f32 %v658_v39, %v598_v45 }
0x11fd   :  { %v663_v40 = vpop.permute.xlu0 %662 }
0x11fe   :  { %v665_v41 = vmul.f32 %v663_v40, %v658_v39  ;;  %v2238_v40 = vld [vmem:[%s3074_s4 + $0x34] ss:$8 sps:$4 sm:$0xff]  }
0x1200   :  { %667 = vrot.lane.b32.xlu1 %v665_v41, %s2345_s19  ;;  %v2236_v41 = vld [vmem:[%s3074_s4 + $0x30] ss:$8 sps:$4 sm:$0xff]  }
0x1204   :  { %682 = vperm.xlu1 %2181, %v680_v42   ;;  %v2759_v42 = vld [vmem:[%s3075_s6] sm:$0xff]  }
0x1272   :  { %v668_v47 = vpop.permute.xlu1 %667 }
0x1273   :  { %v670_v48 = vadd.f32 %v668_v47, %v660_v46  ;;  %v2768_v46 = vld [vmem:[%s3075_s6 + $0x8] sm:$0xff]  }
0x1275   :  { %2283 = vtanh.f32 %v670_v48 }
0x127f   :  { %v2284_v49 = vpop.eup %2283 }
0x1280   :  { %673 = vrot.lane.b32.xlu0 %v2284_v49, %s2344_s18 }
0x1283   :  { %v2685_v51 = vpop.permute.xlu1 %682 }
0x1284   :  { %vm684_vm14 = vcmp.eq.s32.totalorder %v2685_v51, 1  ;;  %v1688_v51 = vld [vmem:[%s3077_s7] sm:$0xff] }
0x1285   :  { %v685_v43 = vsel %vm684_vm14, %v670_v48, %v598_v45  ;;  %v609_v48 = vsel %vm597_vm6, %v2657_v13, 0.0  ;;  %v824_v13 = vrot.slane %v348_v33, 4 }
0x12f2   :  { %v674_v50 = vpop.permute.xlu0 %673 }
0x12f3   :  { %v676_v1 = vmul.f32 %v674_v50, %v658_v39  ;;  %v2235_v39 = vld [vmem:[%s3074_s4 + $0x24] ss:$8 sps:$4 sm:$0xff]  }
0x12f4   :  { %934 = vmatprep.subr.bf16.mxu0 %v2235_v39 }
0x12f5   :  { %690 = vrot.lane.b32.xlu1 %v676_v1, %s2344_s18  ;;  %687 = vrot.lane.b32.xlu0 %v676_v1, %s2345_s19  ;;  %v2702_v6 = vsel %vm684_vm14, %v676_v1, 0.0  ;;  %v2782_v1 = vld [vmem:[%s3075_s6 + $0x10] sm:$0xff]  }
0x12f6   :  { %v788_v11 = vrot.slane %v2702_v6, 4  ;;  %935 = vmatpush1.bf16.msra.mxu0 %v2233_v27 }
0x12f7   :  { %936 = vmatprep.subr.bf16.mxu0 %v2238_v40 }
0x12f8   :  { %v2188_v23 = vpack.i.bf16 %v808_v22, %v788_v11 }
0x12fa   :  { %937 = vmatpush1.bf16.msra.mxu0 %v2236_v41 }
0x12fb   :  { %2030 = vmatprep.subr.bf16.mxu0 %v2341_v0 }
0x1367   :  { %v691_v52 = vpop.permute.xlu1 %690  ;;  %v688_v53 = vpop.permute.xlu0 %687 }
0x1368   :  { %v693_v54 = vsel %vm170_vm9, %v688_v53, %v691_v52  ;;  %v798_v52 = vrot.slane %v609_v48, 4 }
0x1369   :  { %v694_v3 = vmul.f32 %v2488_v32, %v693_v54 }
0x136b   :  { %v695_v55 = vsel %vm684_vm14, %v694_v3, %v608_v19 }
0x136c   :  { %v697_v4 = vpack.c.bf16 %v695_v55, %v695_v55  ;;  %v2790_v55 = vld [vmem:[%s3075_s6 + $0x18] sm:$0xff]  }
0x136e   :  { %2015 = vmatmul.mubr.msk.bf16.vlgmr.msra.gmra.mrb[12].mxu1 %vm87_vm11, %v697_v4  ;;  %v2213_v4 = vpack.i.bf16 %v2702_v6, %v2708_v9 }
0x136f   :  { %2026 = vmatprep.mubr.msk.bf16.mxu1 %vm2342_vm0, %v2341_v0  ;;  %2019 = vmatpush3.bf16.msra.mxu1 %v2759_v42 }
0x1370   :  { %2020 = vmatprep.subr.bf16.mxu1 %v2341_v0 }
0x1373   :  { %2021 = vmatpush3.bf16.msra.mxu1 %v2768_v46 }
0x1374   :  { %2022 = vmatprep.subr.bf16.mxu1 %v2341_v0 }
0x1377   :  { %2023 = vmatpush3.bf16.msra.mxu1 %v2782_v1 }
0x1378   :  { %2024 = vmatprep.subr.bf16.mxu1 %v2341_v0 }
0x137b   :  { %2025 = vmatpush3.bf16.msra.mxu1 %v2790_v55 }
0x137c   :  { %2042 = vmatprep.subr.bf16.mxu1 %v2341_v0 }
0x137e   :  { %2027 = vmatmul.mubr.bf16.vlgmr.msra.gmra.mrb[16].mxu1 %v2343_v2 }
0x137f   :  { %2043 = vmatpush3.bf16.msra.mxu1 %v2759_v42  ;;  %2050 = vmatprep.mubr.msk.bf16.mxu1 %vm2342_vm0, %v2341_v0 }
0x1380   :  { %2044 = vmatprep.subr.bf16.mxu1 %v2341_v0 }
0x1383   :  { %2045 = vmatpush3.bf16.msra.mxu1 %v2768_v46 }
0x1384   :  { %2046 = vmatprep.subr.bf16.mxu1 %v2341_v0 }
0x1387   :  { %2047 = vmatpush3.bf16.msra.mxu1 %v2782_v1 }
0x1388   :  { %2048 = vmatprep.subr.bf16.mxu1 %v2341_v0 }
0x138b   :  { %2049 = vmatpush3.bf16.msra.mxu1 %v2790_v55 }
0x138c   :  { %2066 = vmatprep.subr.bf16.mxu1 %v2341_v0 }
0x1441   :  { %v735_v57 = vpop.f32.mrb[12].mxu1 }
0x1442   :  { %v741_v5 = vadd.f32 %v735_v57, %v54_v56  ;;  %v2016_v58 = vpop.f32.mrb[13].mxu1  ;;  %v840_v56 = vrot.slane %v174_v37, 4 }
0x1443   :  { %v738_v61 = vpop.f32.mrb[14].mxu1  ;;  %v832_v58 = vrot.slane %v261_v28, 4 }
0x1444   :  { %2285 = vtanh.f32 %v741_v5  ;;  %v2017_v62 = vpop.f32.mrb[15].mxu1  ;;  %v742_v12 = vmul.f32 0.5, %v741_v5  ;;  %v2208_v57 = vpack.i.bf16 %v840_v56, %v824_v13  ;;  %v816_v5 = vrot.slane %v435_v26, 4 }
0x1446   :  { %2287 = vtanh.f32 %v742_v12  ;;  %v2218_v61 = vpack.i.bf16 %v832_v58, %v816_v5  ;;  %v880_v5 = vsub.s32 1, %v2482_v29  ;;  %v872_v58 = vld [vmem:[%s3076_s5] sm:$0x3] }
0x144e   :  { %v2286_v63 = vpop.eup %2285 }
0x144f   :  { %749 = vrot.lane.b32.xlu0 %v2286_v63, %s2344_s18 }
0x1450   :  { %v2288_v15 = vpop.eup %2287 }
0x1451   :  { %v744_v16 = vmul.f32 0.5, %v2288_v15  ;;  %v1081_v13 = vpop.f32.mrb[16].mxu1 }
0x1453   :  { %769 = vperm.xlu0 %2182, %v767_v10   ;;  %v745_v17 = vadd.f32 0.5, %v744_v16 }
0x1455   :  { %v747_v20 = vmul.f32 %v745_v17, %v685_v43 }
0x1457   :  { %2189 = vrot.lane.b32.xlu0 %v2188_v23, %s2344_s18 }
0x14c1   :  { %v750_v18 = vpop.permute.xlu0 %749 }
0x14c2   :  { %v752_v19 = vmul.f32 %v750_v18, %v745_v17 }
0x14c4   :  { %754 = vrot.lane.b32.xlu1 %v752_v19, %s2345_s19 }
0x14d2   :  { %v2762_v45 = vpop.permute.xlu0 %769 }
0x14d3   :  { %vm771_vm7 = vcmp.eq.s32.totalorder %v2762_v45, 1  ;;  %v1694_v45 = vld [vmem:[%s3077_s7 + $0x30] sm:$0xff] }
0x14d6   :  { %v2190_v63 = vpop.permute.xlu0 %2189 }
0x14d7   :  { %v2192_v11 = vunpack.i.h.bf16 %v2190_v63  ;;  %v2191_v22 = vunpack.i.l.bf16 %v2190_v63 }
0x1536   :  { %v755_v21 = vpop.permute.xlu1 %754 }
0x1537   :  { %v757_v24 = vadd.f32 %v755_v21, %v747_v20 }
0x1539   :  { %2289 = vtanh.f32 %v757_v24 }
0x1543   :  { %v2290_v25 = vpop.eup %2289 }
0x1544   :  { %760 = vrot.lane.b32.xlu1 %v2290_v25, %s2344_s18 }
0x1548   :  { %2184 = vrot.lane.b32.xlu1 %v2183_v30, %s2345_s19 }
0x154c   :  { %2194 = vrot.lane.b32.xlu1 %v2193_v38, %s2345_s19 }
0x15b6   :  { %v761_v47 = vpop.permute.xlu1 %760 }
0x15b7   :  { %v763_v49 = vmul.f32 %v761_v47, %v745_v17 }
0x15b9   :  { %v772_v50 = vsel %vm771_vm7, %v763_v49, 0.0 }
0x15ba   :  { %v2198_v53 = vpack.i.bf16 %v772_v50, %v609_v48  ;;  %v778_v54 = vrot.slane %v772_v50, 4  ;;  %v2185_v62 = vpop.permute.xlu1 %2184 }
0x15bb   :  { %v2187_v6 = vunpack.i.h.bf16 %v2185_v62  ;;  %v2186_v9 = vunpack.i.l.bf16 %v2185_v62  ;;  %v881_v62 = vrot.slane %v872_v58, %v880_v5 }
0x15bc   :  { %2199 = vrot.lane.b32.xlu1 %v2198_v53, %s2345_s19  ;;  %v2203_v3 = vpack.i.bf16 %v798_v52, %v778_v54 }
0x15bd   :  { %v812_v23 = vsel %vm170_vm9, %v2187_v6, %v2192_v11  ;;  %v792_v12 = vsel %vm170_vm9, %v2186_v9, %v2191_v22 }
0x15be   :  { %2204 = vrot.lane.b32.xlu0 %v2203_v3, %s2344_s18  ;;  %v2195_v10 = vpop.permute.xlu1 %2194  ;;  %v849_v20 = vrot.slane %v812_v23, 4  ;;  %v846_v21 = vrot.slane %v792_v12, 4 }
0x15bf   :  { %v2197_v17 = vunpack.i.h.bf16 %v2195_v10  ;;  %v2196_v18 = vunpack.i.l.bf16 %v2195_v10 }
0x15c0   :  { %2214 = vrot.lane.b32.xlu1 %v2213_v4, %s2345_s19  ;;  %v2028_v4 = vpop.f32.mrb[17].mxu1 }
0x15c1   :  { %v1084_v56 = vpop.f32.mrb[18].mxu1 }
0x15c2   :  { %2209 = vrot.lane.b32.xlu0 %v2208_v57, %s2344_s18  ;;  %v2029_v57 = vpop.f32.mrb[19].mxu1 }
0x15c6   :  { %2219 = vrot.lane.b32.xlu0 %v2218_v61, %s2344_s18  ;;  %v876_v61 = vsub.s32 0, %v2482_v29 }
0x15c8   :  { %v877_v6 = vrot.slane %v872_v58, %v876_v61 }
0x162e   :  { %v2200_v15 = vpop.permute.xlu1 %2199 }
0x162f   :  { %v2202_v26 = vunpack.i.h.bf16 %v2200_v15  ;;  %v2201_v34 = vunpack.i.l.bf16 %v2200_v15 }
0x1630   :  { %v2205_v16 = vpop.permute.xlu0 %2204 }
0x1631   :  { %v2207_v19 = vunpack.i.h.bf16 %v2205_v16  ;;  %v2206_v43 = vunpack.i.l.bf16 %v2205_v16 }
0x1632   :  { %v2215_v38 = vpop.permute.xlu1 %2214 }
0x1633   :  { %v782_v24 = vsel %vm170_vm9, %v2196_v18, %v2206_v43  ;;  %v802_v25 = vsel %vm170_vm9, %v2197_v17, %v2207_v19  ;;  %v2217_v40 = vunpack.i.h.bf16 %v2215_v38  ;;  %v2216_v41 = vunpack.i.l.bf16 %v2215_v38 }
0x1634   :  { %v858_v28 = vsel %vm857_vm12, %v782_v24, %v846_v21  ;;  %v859_v30 = vsel %vm857_vm12, %v802_v25, %v849_v20  ;;  %v2210_v33 = vpop.permute.xlu0 %2209 }
0x1635   :  { %v862_v7 = vpack.c.bf16 %v859_v30, %v858_v28  ;;  %v2212_v37 = vunpack.i.h.bf16 %v2210_v33  ;;  %v2211_v59 = vunpack.i.l.bf16 %v2210_v33 }
0x1637   :  { %v828_v35 = vsel %vm170_vm9, %v2201_v34, %v2211_v59  ;;  %v844_v39 = vsel %vm170_vm9, %v2202_v26, %v2212_v37  ;;  %1811 = vmatmul.mubr.msk.bf16.vlgmr.msra.gmra.mrb[16].mxu0 %vm87_vm11, %v862_v7 }
0x1638   :  { %v2220_v27 = vpop.permute.xlu0 %2219  ;;  %972 = vmatprep.mubr.bf16.mxu0 %v2343_v2  ;;  %2031 = vmatpush3.bf16.msra.mxu0 %v2759_v42  ;;  %v852_v49 = vrot.slane %v828_v35, 4  ;;  %v855_v50 = vrot.slane %v844_v39, 4 }
0x1639   :  { %v2222_v47 = vunpack.i.h.bf16 %v2220_v27  ;;  %v2221_v48 = vunpack.i.l.bf16 %v2220_v27  ;;  %2032 = vmatprep.subr.bf16.mxu0 %v2341_v0 }
0x163b   :  { %v820_v52 = vsel %vm170_vm9, %v2216_v41, %v2221_v48  ;;  %v836_v53 = vsel %vm170_vm9, %v2217_v40, %v2222_v47 }
0x163c   :  { %v860_v54 = vsel %vm857_vm12, %v820_v52, %v852_v49  ;;  %v861_v3 = vsel %vm857_vm12, %v836_v53, %v855_v50  ;;  %2033 = vmatpush3.bf16.msra.mxu0 %v2768_v46 }
0x163d   :  { %v863_v2 = vpack.c.bf16 %v861_v3, %v860_v54  ;;  %2034 = vmatprep.subr.bf16.mxu0 %v2341_v0 }
0x163f   :  { %1812 = vmatmul.mubr.msk.bf16.gmra.mrb[20].mxu0 %vm87_vm11, %v863_v2 }
0x1640   :  { %2035 = vmatpush3.bf16.msra.mxu0 %v2782_v1  ;;  %2038 = vmatprep.mubr.msk.bf16.mxu0 %vm2342_vm0, %v2341_v0 }
0x1641   :  { %2036 = vmatprep.subr.bf16.mxu0 %v2341_v0 }
0x1644   :  { %2037 = vmatpush3.bf16.msra.mxu0 %v2790_v55 }
0x1645   :  { %2054 = vmatprep.subr.bf16.mxu0 %v2341_v0 }
0x170a   :  { %v964_v63 = vpop.f32.mrb[16].mxu0 }
0x170b   :  { %v966_v9 = vpop.f32.mrb[17].mxu0  ;;  %v965_v18 = vadd.f32 %v964_v63, %v877_v6 }
0x170c   :  { %v967_v10 = vadd.f32 %v966_v9, %v881_v62  ;;  %v968_v11 = vpop.f32.mrb[18].mxu0 }
0x170d   :  { %v969_v22 = vadd.f32 %v968_v11, %v877_v6  ;;  %v970_v23 = vpop.f32.mrb[19].mxu0  ;;  %v985_v38 = vrot.slane %v965_v18, 4 }
0x170e   :  { %v971_v12 = vadd.f32 %v970_v23, %v881_v62  ;;  %v1012_v34 = vrot.slane %v967_v10, 4 }
0x170f   :  { %v993_v26 = vrot.slane %v969_v22, 4 }
0x1710   :  { %v1004_v20 = vrot.slane %v971_v12, 4 }
0x1712   :  { %v974_v15 = vpop.f32.mrb[20].mxu0 }
0x1713   :  { %v975_v16 = vadd.f32 %v974_v15, %v877_v6  ;;  %v976_v17 = vpop.f32.mrb[21].mxu0 }
0x1714   :  { %v977_v19 = vadd.f32 %v976_v17, %v881_v62  ;;  %v978_v43 = vpop.f32.mrb[22].mxu0 }
0x1715   :  { %v1001_v21 = vrot.slane %v975_v16, 4  ;;  %v979_v24 = vadd.f32 %v978_v43, %v877_v6  ;;  %v980_v25 = vpop.f32.mrb[23].mxu0  ;;  %v2842_v29 = vsel %vm857_vm12, %v975_v16, %v971_v12 }
0x1716   :  { %v996_v28 = vrot.slane %v977_v19, 4  ;;  %v981_v30 = vadd.f32 %v980_v25, %v881_v62  ;;  %v2845_v33 = vsel %vm857_vm12, %v969_v22, %v977_v19 }
0x1717   :  { %v1009_v7 = vrot.slane %v979_v24, 4  ;;  %v2848_v37 = vsel %vm857_vm12, %v1001_v21, %v1004_v20  ;;  %v2851_v59 = vsel %vm857_vm12, %v979_v24, %v967_v10 }
0x1718   :  { %v988_v35 = vrot.slane %v981_v30, 4  ;;  %v983_v39 = vsel %vm857_vm12, %v965_v18, %v981_v30  ;;  %v2855_v27 = vsel %vm857_vm12, %v993_v26, %v996_v28 }
0x1719   :  { %v1087_v40 = vadd.f32 %v1081_v13, %v983_v39  ;;  %v2858_v41 = vsel %vm857_vm12, %v1009_v7, %v1012_v34 }
0x171a   :  { %v990_v47 = vsel %vm857_vm12, %v985_v38, %v988_v35 }
0x171b   :  { %2291 = vtanh.f32 %v1087_v40  ;;  %v1088_v49 = vmul.f32 0.5, %v1087_v40 }
0x171d   :  { %2293 = vtanh.f32 %v1088_v49 }
0x1725   :  { %v2292_v48 = vpop.eup %2291 }
0x1726   :  { %1095 = vrot.lane.b32.xlu1 %v2292_v48, %s2344_s18 }
0x1727   :  { %v2294_v50 = vpop.eup %2293 }
0x1728   :  { %v1090_v52 = vmul.f32 0.5, %v2294_v50 }
0x172a   :  { %v1091_v53 = vadd.f32 0.5, %v1090_v52 }
0x172c   :  { %v1093_v2 = vmul.f32 0.0, %v1091_v53 }
0x1798   :  { %v1096_v54 = vpop.permute.xlu1 %1095 }
0x1799   :  { %v1098_v3 = vmul.f32 %v1096_v54, %v1091_v53 }
0x179b   :  { %1100 = vrot.lane.b32.xlu0 %v1098_v3, %s2345_s19 }
0x180d   :  { %v1101_v13 = vpop.permute.xlu0 %1100 }
0x180e   :  { %v1103_v4 = vadd.f32 %v1101_v13, %v1093_v2 }
0x1810   :  { %2295 = vtanh.f32 %v1103_v4  ;;  %v1110_v21 = vsel %vm161_vm10, %v1103_v4, 0.0 }
0x181a   :  { %v2296_v56 = vpop.eup %2295 }
0x181b   :  { %1106 = vrot.lane.b32.xlu1 %v2296_v56, %s2344_s18 }
0x188d   :  { %v1107_v57 = vpop.permute.xlu1 %1106 }
0x188e   :  { %v1109_v5 = vmul.f32 %v1107_v57, %v1091_v53 }
0x1890   :  { %1115 = vrot.lane.b32.xlu1 %v1109_v5, %s2344_s18  ;;  %1112 = vrot.lane.b32.xlu0 %v1109_v5, %s2345_s19 }
0x1902   :  { %v1116_v58 = vpop.permute.xlu1 %1115  ;;  %v1113_v61 = vpop.permute.xlu0 %1112 }
0x1903   :  { %v1118_v62 = vsel %vm170_vm9, %v1113_v61, %v1116_v58 }
0x1904   :  { %v1119_v63 = vmul.f32 %v2488_v32, %v1118_v62 }
0x1906   :  { %v1120_v6 = vsel %vm161_vm10, %v1119_v63, 0.0  ;;  %vm1785_vm10 = vcmask 1024  }
0x1907   :  { %v1121_v9 = vpack.c.bf16 %v1120_v6, %v1120_v6 }
0x1909   :  { %2039 = vmatmul.mubr.msk.bf16.vlgmr.msra.gmra.mrb[24].mxu0 %vm87_vm11, %v1121_v9 }
0x190a   :  { %2055 = vmatpush3.bf16.msra.mxu0 %v2759_v42  ;;  %2062 = vmatprep.mubr.msk.bf16.mxu0 %vm2342_vm0, %v2341_v0 }
0x190b   :  { %2056 = vmatprep.subr.bf16.mxu0 %v2341_v0 }
0x190e   :  { %2057 = vmatpush3.bf16.msra.mxu0 %v2768_v46 }
0x190f   :  { %2058 = vmatprep.subr.bf16.mxu0 %v2341_v0 }
0x1912   :  { %2059 = vmatpush3.bf16.msra.mxu0 %v2782_v1 }
0x1913   :  { %2060 = vmatprep.subr.bf16.mxu0 %v2341_v0 }
0x1916   :  { %2061 = vmatpush3.bf16.msra.mxu0 %v2790_v55 }
0x1917   :  { %2078 = vmatprep.subr.bf16.mxu0 %v2341_v0 }
0x19dc   :  { %v1159_v10 = vpop.f32.mrb[24].mxu0 }
0x19dd   :  { %v1165_v11 = vadd.f32 %v1159_v10, %v990_v47  ;;  %v2040_v22 = vpop.f32.mrb[25].mxu0 }
0x19de   :  { %v1162_v23 = vpop.f32.mrb[26].mxu0 }
0x19df   :  { %2297 = vtanh.f32 %v1165_v11  ;;  %v2041_v12 = vpop.f32.mrb[27].mxu0  ;;  %v1166_v16 = vmul.f32 0.5, %v1165_v11 }
0x19e1   :  { %2299 = vtanh.f32 %v1166_v16 }
0x19e9   :  { %v2298_v15 = vpop.eup %2297 }
0x19ea   :  { %1173 = vrot.lane.b32.xlu0 %v2298_v15, %s2344_s18 }
0x19eb   :  { %v2300_v17 = vpop.eup %2299 }
0x19ec   :  { %v1168_v18 = vmul.f32 0.5, %v2300_v17 }
0x19ee   :  { %v1169_v19 = vadd.f32 0.5, %v1168_v18 }
0x19f0   :  { %v1171_v24 = vmul.f32 %v1169_v19, %v1110_v21 }
0x1a5c   :  { %v1174_v43 = vpop.permute.xlu0 %1173 }
0x1a5d   :  { %v1176_v20 = vmul.f32 %v1174_v43, %v1169_v19 }
0x1a5f   :  { %1178 = vrot.lane.b32.xlu1 %v1176_v20, %s2345_s19 }
0x1ad1   :  { %v1179_v25 = vpop.permute.xlu1 %1178 }
0x1ad2   :  { %v1181_v26 = vadd.f32 %v1179_v25, %v1171_v24 }
0x1ad4   :  { %2301 = vtanh.f32 %v1181_v26  ;;  %v1188_v57 = vsel %vm249_vm15, %v1181_v26, %v1110_v21 }
0x1ade   :  { %v2302_v28 = vpop.eup %2301 }
0x1adf   :  { %1184 = vrot.lane.b32.xlu0 %v2302_v28, %s2344_s18 }
0x1b51   :  { %v1185_v30 = vpop.permute.xlu0 %1184 }
0x1b52   :  { %v1187_v34 = vmul.f32 %v1185_v30, %v1169_v19 }
0x1b54   :  { %1193 = vrot.lane.b32.xlu0 %v1187_v34, %s2344_s18  ;;  %1190 = vrot.lane.b32.xlu1 %v1187_v34, %s2345_s19 }
0x1bc6   :  { %v1194_v7 = vpop.permute.xlu0 %1193  ;;  %v1191_v38 = vpop.permute.xlu1 %1190 }
0x1bc7   :  { %v1196_v35 = vsel %vm170_vm9, %v1191_v38, %v1194_v7 }
0x1bc8   :  { %v1197_v31 = vmul.f32 %v2488_v32, %v1196_v35 }
0x1bca   :  { %v1198_v39 = vsel %vm249_vm15, %v1197_v31, %v1120_v6 }
0x1bcb   :  { %v1199_v40 = vpack.c.bf16 %v1198_v39, %v1198_v39 }
0x1bcd   :  { %2051 = vmatmul.mubr.msk.bf16.vlgmr.msra.gmra.mrb[20].mxu1 %vm87_vm11, %v1199_v40 }
0x1bce   :  { %2067 = vmatpush3.bf16.msra.mxu1 %v2759_v42  ;;  %2074 = vmatprep.mubr.msk.bf16.mxu1 %vm2342_vm0, %v2341_v0 }
0x1bcf   :  { %2068 = vmatprep.subr.bf16.mxu1 %v2341_v0 }
0x1bd2   :  { %2069 = vmatpush3.bf16.msra.mxu1 %v2768_v46 }
0x1bd3   :  { %2070 = vmatprep.subr.bf16.mxu1 %v2341_v0 }
0x1bd6   :  { %2071 = vmatpush3.bf16.msra.mxu1 %v2782_v1 }
0x1bd7   :  { %2072 = vmatprep.subr.bf16.mxu1 %v2341_v0 }
0x1bda   :  { %2073 = vmatpush3.bf16.msra.mxu1 %v2790_v55 }
0x1bdb   :  { %2090 = vmatprep.subr.bf16.mxu1 %v2341_v0 }
0x1ca0   :  { %v1237_v47 = vpop.f32.mrb[20].mxu1 }
0x1ca1   :  { %v1243_v48 = vadd.f32 %v1237_v47, %v2845_v33  ;;  %v2052_v49 = vpop.f32.mrb[21].mxu1 }
0x1ca2   :  { %v1240_v50 = vpop.f32.mrb[22].mxu1 }
0x1ca3   :  { %2303 = vtanh.f32 %v1243_v48  ;;  %v2053_v52 = vpop.f32.mrb[23].mxu1  ;;  %v1244_v54 = vmul.f32 0.5, %v1243_v48 }
0x1ca5   :  { %2305 = vtanh.f32 %v1244_v54 }
0x1cad   :  { %v2304_v53 = vpop.eup %2303 }
0x1cae   :  { %1251 = vrot.lane.b32.xlu1 %v2304_v53, %s2344_s18 }
0x1caf   :  { %v2306_v3 = vpop.eup %2305 }
0x1cb0   :  { %v1246_v2 = vmul.f32 0.5, %v2306_v3 }
0x1cb2   :  { %v1247_v13 = vadd.f32 0.5, %v1246_v2 }
0x1cb4   :  { %v1249_v33 = vmul.f32 %v1247_v13, %v1188_v57 }
0x1d20   :  { %v1252_v4 = vpop.permute.xlu1 %1251 }
0x1d21   :  { %v1254_v56 = vmul.f32 %v1252_v4, %v1247_v13 }
0x1d23   :  { %1256 = vrot.lane.b32.xlu0 %v1254_v56, %s2345_s19 }
0x1d95   :  { %v1257_v5 = vpop.permute.xlu0 %1256 }
0x1d96   :  { %v1259_v58 = vadd.f32 %v1257_v5, %v1249_v33 }
0x1d98   :  { %2307 = vtanh.f32 %v1259_v58  ;;  %v1266_v26 = vsel %vm336_vm4, %v1259_v58, %v1188_v57 }
0x1da2   :  { %v2308_v61 = vpop.eup %2307 }
0x1da3   :  { %1262 = vrot.lane.b32.xlu1 %v2308_v61, %s2344_s18 }
0x1e15   :  { %v1263_v62 = vpop.permute.xlu1 %1262 }
0x1e16   :  { %v1265_v63 = vmul.f32 %v1263_v62, %v1247_v13 }
0x1e18   :  { %1271 = vrot.lane.b32.xlu1 %v1265_v63, %s2344_s18  ;;  %1268 = vrot.lane.b32.xlu0 %v1265_v63, %s2345_s19 }
0x1e8a   :  { %v1272_v6 = vpop.permute.xlu1 %1271  ;;  %v1269_v9 = vpop.permute.xlu0 %1268 }
0x1e8b   :  { %v1274_v10 = vsel %vm170_vm9, %v1269_v9, %v1272_v6 }
0x1e8c   :  { %v1275_v60 = vmul.f32 %v2488_v32, %v1274_v10 }
0x1e8e   :  { %v1276_v11 = vsel %vm336_vm4, %v1275_v60, %v1198_v39 }
0x1e8f   :  { %v1277_v22 = vpack.c.bf16 %v1276_v11, %v1276_v11 }
0x1e91   :  { %2063 = vmatmul.mubr.msk.bf16.vlgmr.msra.gmra.mrb[28].mxu0 %vm87_vm11, %v1277_v22 }
0x1e92   :  { %2079 = vmatpush3.bf16.msra.mxu0 %v2759_v42  ;;  %2086 = vmatprep.mubr.msk.bf16.mxu0 %vm2342_vm0, %v2341_v0 }
0x1e93   :  { %2080 = vmatprep.subr.bf16.mxu0 %v2341_v0 }
0x1e96   :  { %2081 = vmatpush3.bf16.msra.mxu0 %v2768_v46 }
0x1e97   :  { %2082 = vmatprep.subr.bf16.mxu0 %v2341_v0 }
0x1e9a   :  { %2083 = vmatpush3.bf16.msra.mxu0 %v2782_v1 }
0x1e9b   :  { %2084 = vmatprep.subr.bf16.mxu0 %v2341_v0 }
0x1e9e   :  { %2085 = vmatpush3.bf16.msra.mxu0 %v2790_v55 }
0x1e9f   :  { %2102 = vmatprep.subr.bf16.mxu0 %v2341_v0 }
0x1f64   :  { %v1315_v23 = vpop.f32.mrb[28].mxu0 }
0x1f65   :  { %v1321_v12 = vadd.f32 %v1315_v23, %v2855_v27  ;;  %v2064_v15 = vpop.f32.mrb[29].mxu0 }
0x1f66   :  { %v1318_v16 = vpop.f32.mrb[30].mxu0 }
0x1f67   :  { %2309 = vtanh.f32 %v1321_v12  ;;  %v2065_v17 = vpop.f32.mrb[31].mxu0  ;;  %v1322_v19 = vmul.f32 0.5, %v1321_v12 }
0x1f69   :  { %2311 = vtanh.f32 %v1322_v19 }
0x1f71   :  { %v2310_v18 = vpop.eup %2309 }
0x1f72   :  { %1329 = vrot.lane.b32.xlu0 %v2310_v18, %s2344_s18 }
0x1f73   :  { %v2312_v43 = vpop.eup %2311 }
0x1f74   :  { %v1324_v20 = vmul.f32 0.5, %v2312_v43 }
0x1f76   :  { %v1325_v21 = vadd.f32 0.5, %v1324_v20 }
0x1f78   :  { %v1327_v27 = vmul.f32 %v1325_v21, %v1266_v26 }
0x1fe4   :  { %v1330_v24 = vpop.permute.xlu0 %1329 }
0x1fe5   :  { %v1332_v25 = vmul.f32 %v1330_v24, %v1325_v21 }
0x1fe7   :  { %1334 = vrot.lane.b32.xlu1 %v1332_v25, %s2345_s19 }
0x2059   :  { %v1335_v28 = vpop.permute.xlu1 %1334 }
0x205a   :  { %v1337_v30 = vadd.f32 %v1335_v28, %v1327_v27 }
0x205c   :  { %2313 = vtanh.f32 %v1337_v30  ;;  %v1344_v33 = vsel %vm423_vm8, %v1337_v30, %v1266_v26 }
0x2066   :  { %v2314_v34 = vpop.eup %2313 }
0x2067   :  { %1340 = vrot.lane.b32.xlu0 %v2314_v34, %s2344_s18 }
0x20d9   :  { %v1341_v7 = vpop.permute.xlu0 %1340 }
0x20da   :  { %v1343_v38 = vmul.f32 %v1341_v7, %v1325_v21 }
0x20dc   :  { %1349 = vrot.lane.b32.xlu0 %v1343_v38, %s2344_s18  ;;  %1346 = vrot.lane.b32.xlu1 %v1343_v38, %s2345_s19 }
0x214e   :  { %v1350_v35 = vpop.permute.xlu0 %1349  ;;  %v1347_v31 = vpop.permute.xlu1 %1346 }
0x214f   :  { %v1352_v39 = vsel %vm170_vm9, %v1347_v31, %v1350_v35 }
0x2150   :  { %v1353_v36 = vmul.f32 %v2488_v32, %v1352_v39 }
0x2152   :  { %v1354_v40 = vsel %vm423_vm8, %v1353_v36, %v1276_v11 }
0x2153   :  { %v1355_v47 = vpack.c.bf16 %v1354_v40, %v1354_v40 }
0x2155   :  { %2075 = vmatmul.mubr.msk.bf16.vlgmr.msra.gmra.mrb[24].mxu1 %vm87_vm11, %v1355_v47 }
0x2156   :  { %2091 = vmatpush3.bf16.msra.mxu1 %v2759_v42  ;;  %2098 = vmatprep.mubr.msk.bf16.mxu1 %vm2342_vm0, %v2341_v0 }
0x2157   :  { %2092 = vmatprep.subr.bf16.mxu1 %v2341_v0 }
0x215a   :  { %2093 = vmatpush3.bf16.msra.mxu1 %v2768_v46 }
0x215b   :  { %2094 = vmatprep.subr.bf16.mxu1 %v2341_v0 }
0x215e   :  { %2095 = vmatpush3.bf16.msra.mxu1 %v2782_v1 }
0x215f   :  { %2096 = vmatprep.subr.bf16.mxu1 %v2341_v0 }
0x2162   :  { %2097 = vmatpush3.bf16.msra.mxu1 %v2790_v55 }
0x2228   :  { %v1393_v48 = vpop.f32.mrb[24].mxu1 }
0x2229   :  { %v1399_v49 = vadd.f32 %v1393_v48, %v2842_v29  ;;  %v2076_v50 = vpop.f32.mrb[25].mxu1 }
0x222a   :  { %v1396_v52 = vpop.f32.mrb[26].mxu1 }
0x222b   :  { %2315 = vtanh.f32 %v1399_v49  ;;  %v2077_v53 = vpop.f32.mrb[27].mxu1  ;;  %v1400_v3 = vmul.f32 0.5, %v1399_v49 }
0x222d   :  { %2317 = vtanh.f32 %v1400_v3 }
0x2235   :  { %v2316_v54 = vpop.eup %2315 }
0x2236   :  { %1407 = vrot.lane.b32.xlu1 %v2316_v54, %s2344_s18 }
0x2237   :  { %v2318_v2 = vpop.eup %2317 }
0x2238   :  { %v1402_v13 = vmul.f32 0.5, %v2318_v2 }
0x223a   :  { %v1403_v4 = vadd.f32 0.5, %v1402_v13 }
0x223c   :  { %v1405_v29 = vmul.f32 %v1403_v4, %v1344_v33 }
0x22a8   :  { %v1408_v56 = vpop.permute.xlu1 %1407 }
0x22a9   :  { %v1410_v57 = vmul.f32 %v1408_v56, %v1403_v4 }
0x22ab   :  { %1412 = vrot.lane.b32.xlu0 %v1410_v57, %s2345_s19 }
0x231d   :  { %v1413_v5 = vpop.permute.xlu0 %1412 }
0x231e   :  { %v1415_v58 = vadd.f32 %v1413_v5, %v1405_v29 }
0x2320   :  { %2319 = vtanh.f32 %v1415_v58 }
0x232a   :  { %v2320_v61 = vpop.eup %2319 }
0x232b   :  { %1418 = vrot.lane.b32.xlu1 %v2320_v61, %s2344_s18 }
0x239d   :  { %v1419_v62 = vpop.permute.xlu1 %1418 }
0x239e   :  { %v1421_v63 = vmul.f32 %v1419_v62, %v1403_v4 }
0x23a0   :  { %1427 = vrot.lane.b32.xlu1 %v1421_v63, %s2344_s18  ;;  %1424 = vrot.lane.b32.xlu0 %v1421_v63, %s2345_s19 }
0x2412   :  { %v1428_v6 = vpop.permute.xlu1 %1427  ;;  %v1425_v9 = vpop.permute.xlu0 %1424 }
0x2413   :  { %v1430_v10 = vsel %vm170_vm9, %v1425_v9, %v1428_v6 }
0x2414   :  { %v1431_v8 = vmul.f32 %v2488_v32, %v1430_v10 }
0x2416   :  { %v1432_v60 = vsel %vm510_vm1, %v1431_v8, %v1354_v40 }
0x2417   :  { %v1433_v11 = vpack.c.bf16 %v1432_v60, %v1432_v60 }
0x2419   :  { %2087 = vmatmul.mubr.msk.bf16.vlgmr.msra.gmra.mrb[32].mxu0 %vm87_vm11, %v1433_v11 }
0x241a   :  { %2103 = vmatpush3.bf16.msra.mxu0 %v2759_v42  ;;  %2110 = vmatprep.mubr.msk.bf16.mxu0 %vm2342_vm0, %v2341_v0 }
0x241b   :  { %2104 = vmatprep.subr.bf16.mxu0 %v2341_v0 }
0x241e   :  { %2105 = vmatpush3.bf16.msra.mxu0 %v2768_v46 }
0x241f   :  { %2106 = vmatprep.subr.bf16.mxu0 %v2341_v0 }
0x2422   :  { %2107 = vmatpush3.bf16.msra.mxu0 %v2782_v1 }
0x2423   :  { %2108 = vmatprep.subr.bf16.mxu0 %v2341_v0 }
0x2426   :  { %2109 = vmatpush3.bf16.msra.mxu0 %v2790_v55  ;;  %v1422_v55 = vsel %vm510_vm1, %v1415_v58, %v1344_v33 }
0x24ec   :  { %v1471_v22 = vpop.f32.mrb[32].mxu0 }
0x24ed   :  { %v1477_v23 = vadd.f32 %v1471_v22, %v2848_v37  ;;  %v2088_v12 = vpop.f32.mrb[33].mxu0 }
0x24ee   :  { %v1474_v42 = vpop.f32.mrb[34].mxu0 }
0x24ef   :  { %2321 = vtanh.f32 %v1477_v23  ;;  %v2089_v15 = vpop.f32.mrb[35].mxu0  ;;  %v1478_v17 = vmul.f32 0.5, %v1477_v23 }
0x24f1   :  { %2323 = vtanh.f32 %v1478_v17 }
0x24f9   :  { %v2322_v16 = vpop.eup %2321 }
0x24fa   :  { %1485 = vrot.lane.b32.xlu0 %v2322_v16, %s2344_s18 }
0x24fb   :  { %v2324_v46 = vpop.eup %2323 }
0x24fc   :  { %v1480_v18 = vmul.f32 0.5, %v2324_v46 }
0x24fe   :  { %v1481_v19 = vadd.f32 0.5, %v1480_v18 }
0x2500   :  { %v1483_v37 = vmul.f32 %v1481_v19, %v1422_v55 }
0x256c   :  { %v1486_v1 = vpop.permute.xlu0 %1485 }
0x256d   :  { %v1488_v43 = vmul.f32 %v1486_v1, %v1481_v19 }
0x256f   :  { %1490 = vrot.lane.b32.xlu1 %v1488_v43, %s2345_s19  ;;  %v2347_v43 = vmov 0.0|0.0  }
0x2570   :  { %2149 = vmatprep.subr.bf16.mxu1 %v2347_v43 }
0x25e1   :  { %v1491_v20 = vpop.permute.xlu1 %1490 }
0x25e2   :  { %v1493_v21 = vadd.f32 %v1491_v20, %v1483_v37  ;;  %v1690_v37 = vld [vmem:[%s3077_s7 + $0x10] sm:$0xff] }
0x25e4   :  { %2325 = vtanh.f32 %v1493_v21 }
0x25ee   :  { %v2326_v24 = vpop.eup %2325 }
0x25ef   :  { %1496 = vrot.lane.b32.xlu0 %v2326_v24, %s2344_s18  ;;  %v1691_v24 = vld [vmem:[%s3077_s7 + $0x18] sm:$0xff] }
0x2661   :  { %v1497_v25 = vpop.permute.xlu0 %1496 }
0x2662   :  { %v1499_v26 = vmul.f32 %v1497_v25, %v1481_v19 }
0x2664   :  { %1505 = vrot.lane.b32.xlu0 %v1499_v26, %s2344_s18  ;;  %1502 = vrot.lane.b32.xlu1 %v1499_v26, %s2345_s19  ;;  %v2153_v26 = vpack.c.bf16 %v1691_v24, %v1690_v37 }
0x26d6   :  { %v1506_v27 = vpop.permute.xlu0 %1505  ;;  %v1503_v28 = vpop.permute.xlu1 %1502 }
0x26d7   :  { %v1508_v30 = vsel %vm170_vm9, %v1503_v28, %v1506_v27  ;;  %v1692_v27 = vld [vmem:[%s3077_s7 + $0x20] sm:$0xff] }
0x26d8   :  { %v1509_v44 = vmul.f32 %v2488_v32, %v1508_v30  ;;  %v1695_v30 = vld [vmem:[%s3077_s7 + $0x38] sm:$0xff] }
0x26da   :  { %v1510_v34 = vsel %vm597_vm6, %v1509_v44, %v1432_v60  ;;  %v2159_v44 = vpack.c.bf16 %v1695_v30, %v1694_v45 }
0x26db   :  { %v1511_v7 = vpack.c.bf16 %v1510_v34, %v1510_v34 }
0x26dd   :  { %2099 = vmatmul.mubr.msk.bf16.vlgmr.msra.gmra.mrb[28].mxu1 %vm87_vm11, %v1511_v7  ;;  %v1697_v7 = vld [vmem:[%s3077_s7 + $0x48] sm:$0xff] }
0x26de   :  { %2146 = vmatprep.mubr.msk.f32.mxu1 %vm2342_vm0, %v2341_v0  ;;  %v1500_v0 = vsel %vm597_vm6, %v1493_v21, %v1422_v55  ;;  %v1689_v55 = vld [vmem:[%s3077_s7 + $0x8] sm:$0xff]  ;;  %vm1686_vm0 = vcmask 785408  }
0x26df   :  { %v2150_v21 = vpack.c.bf16 %v1689_v55, %v1688_v51 }
0x26e1   :  { %2151 = vmatpush3.bf16.msra.mxu1 %v2150_v21 }
0x26e2   :  { %2152 = vmatprep.subr.bf16.mxu1 %v2347_v43 }
0x26e5   :  { %2154 = vmatpush3.bf16.msra.mxu1 %v2153_v26 }
0x26e6   :  { %2155 = vmatprep.subr.bf16.mxu1 %v2347_v43 }
0x27b0   :  { %v1549_v38 = vpop.f32.mrb[28].mxu1 }
0x27b1   :  { %v1555_v35 = vadd.f32 %v1549_v38, %v2851_v59  ;;  %v2100_v31 = vpop.f32.mrb[29].mxu1 }
0x27b2   :  { %v1552_v39 = vpop.f32.mrb[30].mxu1  ;;  %v1699_v31 = vld [vmem:[%s3077_s7 + $0x58] sm:$0xff] }
0x27b3   :  { %2327 = vtanh.f32 %v1555_v35  ;;  %v2101_v36 = vpop.f32.mrb[31].mxu1  ;;  %v1556_v47 = vmul.f32 0.5, %v1555_v35  ;;  %v1698_v35 = vld [vmem:[%s3077_s7 + $0x50] sm:$0xff] }
0x27b4   :  { %v2165_v39 = vpack.c.bf16 %v1699_v31, %v1698_v35  ;;  %v1700_v36 = vld [vmem:[%s3077_s7 + $0x60] sm:$0xff] }
0x27b5   :  { %2329 = vtanh.f32 %v1556_v47 }
0x27bd   :  { %v2328_v40 = vpop.eup %2327 }
0x27be   :  { %1563 = vrot.lane.b32.xlu1 %v2328_v40, %s2344_s18  ;;  %v1701_v40 = vld [vmem:[%s3077_s7 + $0x68] sm:$0xff] }
0x27bf   :  { %v2330_v48 = vpop.eup %2329  ;;  %v2168_v47 = vpack.c.bf16 %v1701_v40, %v1700_v36 }
0x27c0   :  { %v1558_v49 = vmul.f32 0.5, %v2330_v48  ;;  %v1702_v48 = vld [vmem:[%s3077_s7 + $0x70] sm:$0xff] }
0x27c2   :  { %v1559_v50 = vadd.f32 0.5, %v1558_v49  ;;  %v1703_v49 = vld [vmem:[%s3077_s7 + $0x78] sm:$0xff] }
0x27c4   :  { %v1561_v59 = vmul.f32 %v1559_v50, %v1500_v0 }
0x2830   :  { %v1564_v52 = vpop.permute.xlu1 %1563 }
0x2831   :  { %v1566_v53 = vmul.f32 %v1564_v52, %v1559_v50  ;;  %v14_v52 = vstv %s3078_s8 }
0x2832   :  { %15 = vst [vmem:[#allocation2] sm:$0x1] %v14_v52 }
0x2833   :  { %1568 = vrot.lane.b32.xlu0 %v1566_v53, %s2345_s19 }
0x28a5   :  { %v1569_v54 = vpop.permute.xlu0 %1568 }
0x28a6   :  { %v1571_v3 = vadd.f32 %v1569_v54, %v1561_v59 }
0x28a8   :  { %2331 = vtanh.f32 %v1571_v3  ;;  %v1578_v12 = vsel %vm684_vm14, %v1571_v3, %v1500_v0 }
0x28b2   :  { %v2332_v2 = vpop.eup %2331 }
0x28b3   :  { %1574 = vrot.lane.b32.xlu1 %v2332_v2, %s2344_s18 }
0x2925   :  { %v1575_v13 = vpop.permute.xlu1 %1574 }
0x2926   :  { %v1577_v4 = vmul.f32 %v1575_v13, %v1559_v50  ;;  %v2171_v50 = vpack.c.bf16 %v1703_v49, %v1702_v48 }
0x2928   :  { %1583 = vrot.lane.b32.xlu1 %v1577_v4, %s2344_s18  ;;  %1580 = vrot.lane.b32.xlu0 %v1577_v4, %s2345_s19 }
0x299a   :  { %v1584_v56 = vpop.permute.xlu1 %1583  ;;  %v1581_v57 = vpop.permute.xlu0 %1580 }
0x299b   :  { %v1586_v33 = vsel %vm170_vm9, %v1581_v57, %v1584_v56 }
0x299c   :  { %v1587_v14 = vmul.f32 %v2488_v32, %v1586_v33 }
0x299e   :  { %v1588_v29 = vsel %vm684_vm14, %v1587_v14, %v1510_v34  ;;  %v1696_v34 = vld [vmem:[%s3077_s7 + $0x40] sm:$0xff] }
0x299f   :  { %v1589_v5 = vpack.c.bf16 %v1588_v29, %v1588_v29  ;;  %v2162_v38 = vpack.c.bf16 %v1697_v7, %v1696_v34  ;;  %v1824_v14 = vld [vmem:[#allocation2] ss:$0 sm:$0xff] }
0x29a1   :  { %2111 = vmatmul.mubr.msk.bf16.vlgmr.msra.gmra.mrb[36].mxu0 %vm87_vm11, %v1589_v5 }
0x2a74   :  { %v1627_v58 = vpop.f32.mrb[36].mxu0 }
0x2a75   :  { %v1633_v61 = vadd.f32 %v1627_v58, %v2858_v41  ;;  %v2112_v62 = vpop.f32.mrb[37].mxu0 }
0x2a76   :  { %v1630_v63 = vpop.f32.mrb[38].mxu0 }
0x2a77   :  { %2333 = vtanh.f32 %v1633_v61  ;;  %v2113_v6 = vpop.f32.mrb[39].mxu0  ;;  %v1634_v10 = vmul.f32 0.5, %v1633_v61 }
0x2a79   :  { %2335 = vtanh.f32 %v1634_v10 }
0x2a81   :  { %v2334_v9 = vpop.eup %2333 }
0x2a82   :  { %1641 = vrot.lane.b32.xlu0 %v2334_v9, %s2344_s18 }
0x2a83   :  { %v2336_v8 = vpop.eup %2335 }
0x2a84   :  { %v1636_v60 = vmul.f32 0.5, %v2336_v8 }
0x2a86   :  { %v1637_v11 = vadd.f32 0.5, %v1636_v60 }
0x2a88   :  { %v1639_v41 = vmul.f32 %v1637_v11, %v1578_v12 }
0x2af4   :  { %v1642_v22 = vpop.permute.xlu0 %1641 }
0x2af5   :  { %v1644_v23 = vmul.f32 %v1642_v22, %v1637_v11 }
0x2af7   :  { %1646 = vrot.lane.b32.xlu1 %v1644_v23, %s2345_s19 }
0x2b69   :  { %v1647_v42 = vpop.permute.xlu1 %1646 }
0x2b6a   :  { %v1649_v15 = vadd.f32 %v1647_v42, %v1639_v41 }
0x2b6c   :  { %2337 = vtanh.f32 %v1649_v15 }
0x2b76   :  { %v2338_v16 = vpop.eup %2337 }
0x2b77   :  { %1652 = vrot.lane.b32.xlu0 %v2338_v16, %s2344_s18 }
0x2be9   :  { %v1653_v17 = vpop.permute.xlu0 %1652 }
0x2bea   :  { %v1655_v46 = vmul.f32 %v1653_v17, %v1637_v11 }
0x2bec   :  { %1660 = vrot.lane.b32.xlu0 %v1655_v46, %s2344_s18  ;;  %1657 = vrot.lane.b32.xlu1 %v1655_v46, %s2345_s19 }
0x2c5e   :  { %v1661_v18 = vpop.permute.xlu0 %1660  ;;  %v1658_v19 = vpop.permute.xlu1 %1657 }
0x2c5f   :  { %v1663_v1 = vsel %vm170_vm9, %v1658_v19, %v1661_v18 }
0x2c60   :  { %v1664_v20 = vmul.f32 %v2488_v32, %v1663_v1  ;;  %v1693_v32 = vld [vmem:[%s3077_s7 + $0x28] sm:$0xff] }
0x2c61   :  { %v2156_v28 = vpack.c.bf16 %v1693_v32, %v1692_v27 }
0x2c62   :  { %v1665_v25 = vsel %vm771_vm7, %v1664_v20, %v1588_v29 }
0x2c63   :  { %1667 = vrot.lane.b32.xlu1 %v1665_v25, %s2348_s23  ;;  %2157 = vmatpush3.bf16.msra.mxu1 %v2156_v28 }
0x2c64   :  { %2158 = vmatprep.subr.bf16.mxu1 %v2347_v43 }
0x2c67   :  { %2160 = vmatpush3.bf16.msra.mxu1 %v2159_v44 }
0x2c68   :  { %2161 = vmatprep.subr.bf16.mxu1 %v2347_v43 }
0x2c6b   :  { %2163 = vmatpush3.bf16.msra.mxu1 %v2162_v38 }
0x2c6c   :  { %2164 = vmatprep.subr.bf16.mxu1 %v2347_v43 }
0x2c6f   :  { %2166 = vmatpush3.bf16.msra.mxu1 %v2165_v39 }
0x2c70   :  { %2167 = vmatprep.subr.bf16.mxu1 %v2347_v43 }
0x2c73   :  { %2169 = vmatpush3.bf16.msra.mxu1 %v2168_v47 }
0x2c74   :  { %2170 = vmatprep.subr.bf16.mxu1 %v2347_v43 }
0x2c77   :  { %2172 = vmatpush3.bf16.msra.mxu1 %v2171_v50 }
0x2cd5   :  { %v1668_v53 = vpop.permute.xlu1 %1667 }
0x2cd6   :  { %v1670_v0 = vadd.f32 %v1668_v53, %v1665_v25 }
0x2cd8   :  { %v1676_v59 = vrot.slane %v1670_v0, 2  ;;  %v1672_v54 = vrot.slane %v1670_v0, 4  ;;  %v1680_v3 = vrot.slane %v1670_v0, 6 }
0x2cda   :  { %1677 = vrot.lane.b32.xlu1 %v1676_v59, %s2344_s18  ;;  %1673 = vrot.lane.b32.xlu0 %v1672_v54, %s2345_s19 }
0x2cde   :  { %1681 = vrot.lane.b32.xlu0 %v1680_v3, %s2348_s23 }
0x2d4c   :  { %v1674_v2 = vpop.permute.xlu0 %1673  ;;  %v1678_v13 = vpop.permute.xlu1 %1677 }
0x2d4d   :  { %v1684_v4 = vsel %vm170_vm9, %v1670_v0, %v1674_v2 }
0x2d4e   :  { %v1685_v56 = vsel %vm87_vm11, %v1684_v4, %v1678_v13 }
0x2d50   :  { %v1682_v57 = vpop.permute.xlu0 %1681 }
0x2d51   :  { %v1687_v33 = vsel %vm1686_vm0, %v1685_v56, %v1682_v57 }
0x2d52   :  { %2147 = vmatmul.mubr.f32.vlgmr.msra.gmra.mrb[32].mxu1 %v1687_v33 }
0x2e25   :  { %v1777_v29 = vpop.f32.mrb[32].mxu1 }
0x2e26   :  { %v1778_v5 = vadd.f32 %v1824_v14, %v1777_v29  ;;  %v2148_v58 = vpop.f32.mrb[33].mxu1 }
0x2e28   :  { %v1781_v61 = vmul.f32 0.5, %v1778_v5 }
0x2e2a   :  { %2339 = vtanh.f32 %v1781_v61 }
0x2e34   :  { %v2340_v62 = vpop.eup %2339 }
0x2e35   :  { %v1783_v63 = vmul.f32 0.5, %v2340_v62 }
0x2e37   :  { %v1784_v6 = vadd.f32 0.5, %v1783_v63 }
0x2e39   :  { %1786 = vst.msk [vmem:[%s3079_s9] sm:$0x3] %vm1785_vm10, %v1784_v6 }

</bundles_post_ra>
